<compile_context>
chip_gen: v7x
topology: tpu7x:2x2x1
jax: 0.10.0
libtpu: 0.0.40
codegen_flags: <defaults>
</compile_context>

<pallas_src>
import functools

import jax
import jax.numpy as jnp
from jax import lax
from jax.experimental import pallas as pl
from jax.experimental.pallas import tpu as pltpu

_EPS = 1e-5


# -----------------------------------------------------------------------------
# Fused kernel (one image per grid step)
# -----------------------------------------------------------------------------
def _guide_nn_kernel(scal_ref, mask_ref, x_ref, w1_ref, t1_ref, w2_ref,
                     t2_ref, w3_ref, o_ref, p_ref, *, width):
    """Fused GuideNN forward for one image (channels-in-sublanes layout).

    scal_ref : SMEM (3,)             [prelu_alpha1, prelu_alpha2, conv3_bias]
    mask_ref : VMEM (9, H*W)   f32   per-tap boundary masks (zero padding)
    x_ref    : VMEM (1, 3, H*W) f32  input image, spatial flattened into lanes
    w1_ref   : VMEM (16, 27)   bf16  conv1 W^T (BN scale folded)
    t1_ref   : VMEM (16, 1)    f32   conv1 folded bias/BN shift
    w2_ref   : VMEM (16, 144)  bf16  conv2 W^T (BN scale folded)
    t2_ref   : VMEM (16, 1)    f32   conv2 folded bias/BN shift
    w3_ref   : VMEM (16, 1)    f32   conv3 (1x1) weights as a column
    o_ref    : VMEM (1, 1, H*W) f32  lane-dense output row
    p_ref    : VMEM (144, H*W) f32   scratch: transposed patch matrix P^T
    width    : static image width W (for the per-tap lane-roll amounts)
    """
    _, cin, hw = x_ref.shape
    cmid = w2_ref.shape[0]

    a1 = scal_ref[0]
    a2 = scal_ref[1]
    b3 = scal_ref[2]

    taps = [(ky - 1, kx - 1) for ky in range(3) for kx in range(3)]

    def build_patches(act, c):
        # act: (c, HW) f32.  Tap (dy, dx) of a zero-padded 3x3 conv equals a
        # lane roll of the flat activation by -(dy*W+dx) with out-of-image
        # lanes masked to zero (mask precomputed in the wrapper).  No halo
        # buffer, no lane-dim-changing reshape, no concatenate.
        for t, (dy, dx) in enumerate(taps):
            d = dy * width + dx
            if d == 0:
                p_ref[t * c:(t + 1) * c, :] = act
            else:
                shifted = pltpu.roll(act, shift=(-d) % hw, axis=1)
                p_ref[t * c:(t + 1) * c, :] = shifted * mask_ref[t:t + 1, :]

    # ---- conv1 (3x3, 3->16): one (16,27)@(27,HW) bf16 MXU matmul ------------
    build_patches(x_ref[0], cin)
    h1 = jnp.dot(w1_ref[...], p_ref[0:9 * cin, :].astype(jnp.bfloat16),
                 preferred_element_type=jnp.float32)          # (Cmid, HW) f32
    h1 = h1 + t1_ref[...]                                      # folded BN+bias
    h1 = jnp.where(h1 >= 0.0, h1, a1 * h1)                     # PReLU (f32)

    # ---- conv2 (3x3, 16->16): one (16,144)@(144,HW) bf16 MXU matmul ---------
    build_patches(h1, cmid)
    h2 = jnp.dot(w2_ref[...], p_ref[...].astype(jnp.bfloat16),
                 preferred_element_type=jnp.float32)          # (Cmid, HW) f32
    h2 = h2 + t2_ref[...]
    h2 = jnp.where(h2 >= 0.0, h2, a2 * h2)                     # PReLU (f32)

    # ---- conv3 (1x1, 16->1) + tanh: VPU mul + sublane reduce (no M=1 matmul)
    z = jnp.sum(h2 * w3_ref[...], axis=0, keepdims=True) + b3  # (1, HW)
    o_ref[...] = jnp.tanh(z).reshape(1, 1, hw)


# -----------------------------------------------------------------------------
# Wrapper
# -----------------------------------------------------------------------------
def _fold_bn_into_conv(w, b, gamma, beta, mean, var, eps=_EPS):
    """Fold inference-mode BatchNorm into flattened-HWIO conv weights/bias."""
    scale = gamma / jnp.sqrt(var + eps)
    return w * scale[None, :], beta + (b - mean) * scale


def _tap_masks(H, W):
    """(9, H*W) f32 validity masks for the 9 taps of a zero-padded 3x3 conv."""
    ys, xs = jnp.meshgrid(jnp.arange(H), jnp.arange(W), indexing="ij")
    rows = []
    for ky in range(3):
        for kx in range(3):
            dy, dx = ky - 1, kx - 1
            valid = ((ys + dy >= 0) & (ys + dy < H) &
                     (xs + dx >= 0) & (xs + dx < W))
            rows.append(valid.reshape(-1))
    return jnp.stack(rows).astype(jnp.float32)


@jax.jit
def guide_nn_forward(x_nchw, params):
    x = x_nchw.astype(jnp.float32)                 # NCHW kept as-is (no transpose)
    N, Cin, H, W = x.shape
    Cmid = params["w2"].shape[-1]
    HW = H * W

    w1f, t1 = _fold_bn_into_conv(params["w1"], params["b1"], params["g1"],
                                 params["be1"], params["m1"], params["v1"])
    w2f, t2 = _fold_bn_into_conv(params["w2"], params["b2"], params["g2"],
                                 params["be2"], params["m2"], params["v2"])
    # Transposed (Cout, K) bf16 weights for the MXU-lane = H*W orientation.
    w1t = jnp.transpose(w1f).astype(jnp.bfloat16)  # (16, 27)
    w2t = jnp.transpose(w2f).astype(jnp.bfloat16)  # (16, 144)

    scal = jnp.stack([jnp.asarray(params["a1"], jnp.float32),
                      jnp.asarray(params["a2"], jnp.float32),
                      jnp.asarray(params["b3"][0], jnp.float32)])
    mask = _tap_masks(H, W)                        # (9, HW), constant-folded

    x_flat = x.reshape(N, Cin, HW)                 # free row-major collapse

    kernel = functools.partial(_guide_nn_kernel, width=W)

    out_flat = pl.pallas_call(
        kernel,
        out_shape=jax.ShapeDtypeStruct((N, 1, HW), jnp.float32),
        grid=(N,),
        in_specs=[
            pl.BlockSpec(memory_space=pltpu.MemorySpace.SMEM),     # scalars
            pl.BlockSpec((9, HW), lambda n: (0, 0)),               # tap masks
            pl.BlockSpec((1, Cin, HW), lambda n: (n, 0, 0)),       # x (flat NCHW)
            pl.BlockSpec((Cmid, 9 * Cin), lambda n: (0, 0)),       # conv1 W^T
            pl.BlockSpec((Cmid, 1), lambda n: (0, 0)),             # conv1 shift
            pl.BlockSpec((Cmid, 9 * Cmid), lambda n: (0, 0)),      # conv2 W^T
            pl.BlockSpec((Cmid, 1), lambda n: (0, 0)),             # conv2 shift
            pl.BlockSpec((Cmid, 1), lambda n: (0, 0)),             # conv3 w
        ],
        out_specs=pl.BlockSpec((1, 1, HW), lambda n: (n, 0, 0)),
        scratch_shapes=[pltpu.VMEM((9 * Cmid, HW), jnp.float32)],  # P^T scratch
        compiler_params=pltpu.CompilerParams(
            dimension_semantics=("parallel",),
            vmem_limit_bytes=32 * 1024 * 1024),
    )(scal, mask, x_flat, w1t, t1.reshape(Cmid, 1), w2t,
      t2.reshape(Cmid, 1), params["w3"].reshape(Cmid, 1))

    # Free (metadata-only) reshape to the PyTorch NCHW convention (Cout == 1).
    return out_flat.reshape(N, 1, H, W)


# -----------------------------------------------------------------------------
# Pure-JAX reference (mirrors the PyTorch module, BN in inference mode, f32)
# -----------------------------------------------------------------------------
def _conv2d_ref(x_nhwc, w_hwio, bias):
    k = w_hwio.shape[0]
    pad = (k - 1) // 2
    y = lax.conv_general_dilated(
        x_nhwc, w_hwio, (1, 1), [(pad, pad), (pad, pad)],
        dimension_numbers=("NHWC", "HWIO", "NHWC"))
    return y + bias


def guide_nn_ref(x_nchw, params):
    x = jnp.transpose(x_nchw, (0, 2, 3, 1)).astype(jnp.float32)

    def bn(y, g, b, m, v):
        return (y - m) / jnp.sqrt(v + _EPS) * g + b

    def prelu(y, a):
        return jnp.where(y >= 0.0, y, a * y)

    h = _conv2d_ref(x, params["w1"].reshape(3, 3, 3, 16), params["b1"])
    h = prelu(bn(h, params["g1"], params["be1"], params["m1"], params["v1"]),
              params["a1"])
    h = _conv2d_ref(h, params["w2"].reshape(3, 3, 16, 16), params["b2"])
    h = prelu(bn(h, params["g2"], params["be2"], params["m2"], params["v2"]),
              params["a2"])
    h = _conv2d_ref(h, params["w3"].reshape(1, 1, 16, 1), params["b3"])
    return jnp.transpose(jnp.tanh(h), (0, 3, 1, 2))


# -----------------------------------------------------------------------------
# Deterministic parameter init (PyTorch-style fan-in uniform, non-trivial BN)
# -----------------------------------------------------------------------------
def init_params(key):
    ks = jax.random.split(key, 14)

    def uni(k, shape, fan_in):
        bound = 1.0 / jnp.sqrt(float(fan_in))
        return jax.random.uniform(k, shape, jnp.float32, -bound, bound)

    return dict(
        # Conv weights stored flattened-HWIO: (kh*kw*Cin, Cout).
        w1=uni(ks[0], (27, 16), 27), b1=uni(ks[1], (16,), 27),
        w2=uni(ks[2], (144, 16), 144), b2=uni(ks[3], (16,), 144),
        w3=uni(ks[4], (16,), 16), b3=uni(ks[5], (1,), 16),
        # Non-trivial inference-mode BatchNorm statistics (exercise folding).
        g1=jax.random.uniform(ks[6], (16,), jnp.float32, 0.5, 1.5),
        be1=0.1 * jax.random.normal(ks[7], (16,), jnp.float32),
        m1=0.1 * jax.random.normal(ks[8], (16,), jnp.float32),
        v1=jax.random.uniform(ks[9], (16,), jnp.float32, 0.5, 1.5),
        g2=jax.random.uniform(ks[10], (16,), jnp.float32, 0.5, 1.5),
        be2=0.1 * jax.random.normal(ks[11], (16,), jnp.float32),
        m2=0.1 * jax.random.normal(ks[12], (16,), jnp.float32),
        v2=jax.random.uniform(ks[13], (16,), jnp.float32, 0.5, 1.5),
        a1=jnp.asarray(0.25, jnp.float32),
        a2=jnp.asarray(0.25, jnp.float32),
    )


if __name__ == "__main__":
    key = jax.random.PRNGKey(0)
    k_x, k_p = jax.random.split(key)

    # Small, non-square spatial size: exercises the tap-roll / boundary-mask
    # path and keeps the lane-dense output row (H*W = 384) a multiple of 128.
    x = jax.random.normal(k_x, (2, 3, 16, 24), jnp.float32)   # NCHW like PyTorch
    params = init_params(k_p)

    out = jax.block_until_ready(guide_nn_forward(x, params))
    ref = guide_nn_ref(x, params)

    assert out.shape == (2, 1, 16, 24), out.shape
    # Tolerance accounts for bf16 MXU operands (f32 accumulation, f32 ref).
    max_err = float(jnp.max(jnp.abs(out - ref)))
    assert jnp.allclose(out, ref, atol=2e-2, rtol=2e-2), max_err

    print("KERNEL_OK")
</pallas_src>

<mosaic_0001>
module attributes {stable_mosaic.version = 11 : i64} {
  func.func @_guide_nn_kernel(%arg0: i32, %arg1: memref<3xf32, #tpu.memory_space<smem>>, %arg2: memref<9x384xf32, #tpu.memory_space<vmem>>, %arg3: memref<1x3x384xf32, #tpu.memory_space<vmem>>, %arg4: memref<16x27xbf16, #tpu.memory_space<vmem>>, %arg5: memref<16x1xf32, #tpu.memory_space<vmem>>, %arg6: memref<16x144xbf16, #tpu.memory_space<vmem>>, %arg7: memref<16x1xf32, #tpu.memory_space<vmem>>, %arg8: memref<16x1xf32, #tpu.memory_space<vmem>>, %arg9: memref<1x1x384xf32, #tpu.memory_space<vmem>>, %arg10: memref<144x384xf32, #tpu.memory_space<vmem>>) attributes {dimension_semantics = [#tpu.dimension_semantics<parallel>], iteration_bounds = array<i64: 2>, scalar_prefetch = 0 : i64, scratch_operands = 1 : i64, tpu.core_type = #tpu.core_type<tc>, window_params = [{transform_indices = @transform_0, window_bounds = array<i64: 3>}, {pipeline_mode = #tpu.pipeline_mode<synchronous>, transform_indices = @transform_1, window_bounds = array<i64: 9, 384>}, {transform_indices = @transform_2, window_bounds = array<i64: 1, 3, 384>}, {pipeline_mode = #tpu.pipeline_mode<synchronous>, transform_indices = @transform_3, window_bounds = array<i64: 16, 27>}, {pipeline_mode = #tpu.pipeline_mode<synchronous>, transform_indices = @transform_4, window_bounds = array<i64: 16, 1>}, {pipeline_mode = #tpu.pipeline_mode<synchronous>, transform_indices = @transform_5, window_bounds = array<i64: 16, 144>}, {pipeline_mode = #tpu.pipeline_mode<synchronous>, transform_indices = @transform_6, window_bounds = array<i64: 16, 1>}, {pipeline_mode = #tpu.pipeline_mode<synchronous>, transform_indices = @transform_7, window_bounds = array<i64: 16, 1>}, {transform_indices = @transform_8, window_bounds = array<i64: 1, 1, 384>}]} {
    %c0 = arith.constant 0 : index
    %0 = memref.load %arg1[%c0] : memref<3xf32, #tpu.memory_space<smem>>
    %c1 = arith.constant 1 : index
    %1 = memref.load %arg1[%c1] : memref<3xf32, #tpu.memory_space<smem>>
    %c2 = arith.constant 2 : index
    %2 = memref.load %arg1[%c2] : memref<3xf32, #tpu.memory_space<smem>>
    %c0_0 = arith.constant 0 : index
    %c0_1 = arith.constant 0 : index
    %c0_2 = arith.constant 0 : index
    %3 = vector.load %arg3[%c0_0, %c0_1, %c0_2] : memref<1x3x384xf32, #tpu.memory_space<vmem>>, vector<1x3x384xf32>
    %4 = vector.shape_cast %3 : vector<1x3x384xf32> to vector<3x384xf32>
    %c25_i32 = arith.constant 25 : i32
    %5 = tpu.dynamic_rotate %4 by %c25_i32 dim 1 : vector<3x384xf32>, i32 -> vector<3x384xf32>
    %c0_3 = arith.constant 0 : index
    %c0_4 = arith.constant 0 : index
    %6 = vector.load %arg2[%c0_3, %c0_4] : memref<9x384xf32, #tpu.memory_space<vmem>>, vector<1x384xf32>
    %7 = vector.broadcast %6 : vector<1x384xf32> to vector<3x384xf32>
    %8 = arith.mulf %5, %7 : vector<3x384xf32>
    %c0_5 = arith.constant 0 : index
    %c0_6 = arith.constant 0 : index
    %9 = vector.load %arg10[%c0_5, %c0_6] : memref<144x384xf32, #tpu.memory_space<vmem>>, vector<3x384xf32>
    tpu.vector_store %arg10[%c0_5, %c0_6], %8 {strides = array<i32>} : memref<144x384xf32, #tpu.memory_space<vmem>>, vector<3x384xf32>,
    %c24_i32 = arith.constant 24 : i32
    %10 = tpu.dynamic_rotate %4 by %c24_i32 dim 1 : vector<3x384xf32>, i32 -> vector<3x384xf32>
    %c1_7 = arith.constant 1 : index
    %c0_8 = arith.constant 0 : index
    %11 = vector.load %arg2[%c1_7, %c0_8] : memref<9x384xf32, #tpu.memory_space<vmem>>, vector<1x384xf32>
    %12 = vector.broadcast %11 : vector<1x384xf32> to vector<3x384xf32>
    %13 = arith.mulf %10, %12 : vector<3x384xf32>
    %c3 = arith.constant 3 : index
    %c0_9 = arith.constant 0 : index
    %14 = vector.load %arg10[%c3, %c0_9] : memref<144x384xf32, #tpu.memory_space<vmem>>, vector<3x384xf32>
    tpu.vector_store %arg10[%c3, %c0_9], %13 {strides = array<i32>} : memref<144x384xf32, #tpu.memory_space<vmem>>, vector<3x384xf32>,
    %c23_i32 = arith.constant 23 : i32
    %15 = tpu.dynamic_rotate %4 by %c23_i32 dim 1 : vector<3x384xf32>, i32 -> vector<3x384xf32>
    %c2_10 = arith.constant 2 : index
    %c0_11 = arith.constant 0 : index
    %16 = vector.load %arg2[%c2_10, %c0_11] : memref<9x384xf32, #tpu.memory_space<vmem>>, vector<1x384xf32>
    %17 = vector.broadcast %16 : vector<1x384xf32> to vector<3x384xf32>
    %18 = arith.mulf %15, %17 : vector<3x384xf32>
    %c6 = arith.constant 6 : index
    %c0_12 = arith.constant 0 : index
    %19 = vector.load %arg10[%c6, %c0_12] : memref<144x384xf32, #tpu.memory_space<vmem>>, vector<3x384xf32>
    tpu.vector_store %arg10[%c6, %c0_12], %18 {strides = array<i32>} : memref<144x384xf32, #tpu.memory_space<vmem>>, vector<3x384xf32>,
    %c1_i32 = arith.constant 1 : i32
    %20 = tpu.dynamic_rotate %4 by %c1_i32 dim 1 : vector<3x384xf32>, i32 -> vector<3x384xf32>
    %c3_13 = arith.constant 3 : index
    %c0_14 = arith.constant 0 : index
    %21 = vector.load %arg2[%c3_13, %c0_14] : memref<9x384xf32, #tpu.memory_space<vmem>>, vector<1x384xf32>
    %22 = vector.broadcast %21 : vector<1x384xf32> to vector<3x384xf32>
    %23 = arith.mulf %20, %22 : vector<3x384xf32>
    %c9 = arith.constant 9 : index
    %c0_15 = arith.constant 0 : index
    %24 = vector.load %arg10[%c9, %c0_15] : memref<144x384xf32, #tpu.memory_space<vmem>>, vector<3x384xf32>
    tpu.vector_store %arg10[%c9, %c0_15], %23 {strides = array<i32>} : memref<144x384xf32, #tpu.memory_space<vmem>>, vector<3x384xf32>,
    %c12 = arith.constant 12 : index
    %c0_16 = arith.constant 0 : index
    %25 = vector.load %arg10[%c12, %c0_16] : memref<144x384xf32, #tpu.memory_space<vmem>>, vector<3x384xf32>
    tpu.vector_store %arg10[%c12, %c0_16], %4 {strides = array<i32>} : memref<144x384xf32, #tpu.memory_space<vmem>>, vector<3x384xf32>,
    %c383_i32 = arith.constant 383 : i32
    %26 = tpu.dynamic_rotate %4 by %c383_i32 dim 1 : vector<3x384xf32>, i32 -> vector<3x384xf32>
    %c5 = arith.constant 5 : index
    %c0_17 = arith.constant 0 : index
    %27 = vector.load %arg2[%c5, %c0_17] : memref<9x384xf32, #tpu.memory_space<vmem>>, vector<1x384xf32>
    %28 = vector.broadcast %27 : vector<1x384xf32> to vector<3x384xf32>
    %29 = arith.mulf %26, %28 : vector<3x384xf32>
    %c15 = arith.constant 15 : index
    %c0_18 = arith.constant 0 : index
    %30 = vector.load %arg10[%c15, %c0_18] : memref<144x384xf32, #tpu.memory_space<vmem>>, vector<3x384xf32>
    tpu.vector_store %arg10[%c15, %c0_18], %29 {strides = array<i32>} : memref<144x384xf32, #tpu.memory_space<vmem>>, vector<3x384xf32>,
    %c361_i32 = arith.constant 361 : i32
    %31 = tpu.dynamic_rotate %4 by %c361_i32 dim 1 : vector<3x384xf32>, i32 -> vector<3x384xf32>
    %c6_19 = arith.constant 6 : index
    %c0_20 = arith.constant 0 : index
    %32 = vector.load %arg2[%c6_19, %c0_20] : memref<9x384xf32, #tpu.memory_space<vmem>>, vector<1x384xf32>
    %33 = vector.broadcast %32 : vector<1x384xf32> to vector<3x384xf32>
    %34 = arith.mulf %31, %33 : vector<3x384xf32>
    %c18 = arith.constant 18 : index
    %c0_21 = arith.constant 0 : index
    %35 = vector.load %arg10[%c18, %c0_21] : memref<144x384xf32, #tpu.memory_space<vmem>>, vector<3x384xf32>
    tpu.vector_store %arg10[%c18, %c0_21], %34 {strides = array<i32>} : memref<144x384xf32, #tpu.memory_space<vmem>>, vector<3x384xf32>,
    %c360_i32 = arith.constant 360 : i32
    %36 = tpu.dynamic_rotate %4 by %c360_i32 dim 1 : vector<3x384xf32>, i32 -> vector<3x384xf32>
    %c7 = arith.constant 7 : index
    %c0_22 = arith.constant 0 : index
    %37 = vector.load %arg2[%c7, %c0_22] : memref<9x384xf32, #tpu.memory_space<vmem>>, vector<1x384xf32>
    %38 = vector.broadcast %37 : vector<1x384xf32> to vector<3x384xf32>
    %39 = arith.mulf %36, %38 : vector<3x384xf32>
    %c21 = arith.constant 21 : index
    %c0_23 = arith.constant 0 : index
    %40 = vector.load %arg10[%c21, %c0_23] : memref<144x384xf32, #tpu.memory_space<vmem>>, vector<3x384xf32>
    tpu.vector_store %arg10[%c21, %c0_23], %39 {strides = array<i32>} : memref<144x384xf32, #tpu.memory_space<vmem>>, vector<3x384xf32>,
    %c359_i32 = arith.constant 359 : i32
    %41 = tpu.dynamic_rotate %4 by %c359_i32 dim 1 : vector<3x384xf32>, i32 -> vector<3x384xf32>
    %c8 = arith.constant 8 : index
    %c0_24 = arith.constant 0 : index
    %42 = vector.load %arg2[%c8, %c0_24] : memref<9x384xf32, #tpu.memory_space<vmem>>, vector<1x384xf32>
    %43 = vector.broadcast %42 : vector<1x384xf32> to vector<3x384xf32>
    %44 = arith.mulf %41, %43 : vector<3x384xf32>
    %c24 = arith.constant 24 : index
    %c0_25 = arith.constant 0 : index
    %45 = vector.load %arg10[%c24, %c0_25] : memref<144x384xf32, #tpu.memory_space<vmem>>, vector<3x384xf32>
    tpu.vector_store %arg10[%c24, %c0_25], %44 {strides = array<i32>} : memref<144x384xf32, #tpu.memory_space<vmem>>, vector<3x384xf32>,
    %c0_26 = arith.constant 0 : index
    %c0_27 = arith.constant 0 : index
    %46 = vector.load %arg4[%c0_26, %c0_27] : memref<16x27xbf16, #tpu.memory_space<vmem>>, vector<16x27xbf16>
    %c0_28 = arith.constant 0 : index
    %c0_29 = arith.constant 0 : index
    %47 = vector.load %arg10[%c0_28, %c0_29] : memref<144x384xf32, #tpu.memory_space<vmem>>, vector<27x384xf32>
    %48 = arith.truncf %47 : vector<27x384xf32> to vector<27x384xbf16>
    %cst = arith.constant dense<0.000000e+00> : vector<16x384xf32>
    %49 = tpu.matmul %46, %48, %cst {dimension_numbers = #tpu.dot_dimension_numbers<[1], [0], [0], [1], [0, 0, 1, 1], [], []>} : vector<16x27xbf16>, vector<27x384xbf16>, vector<16x384xf32> -> vector<16x384xf32>
    %c0_30 = arith.constant 0 : index
    %c0_31 = arith.constant 0 : index
    %50 = vector.load %arg5[%c0_30, %c0_31] : memref<16x1xf32, #tpu.memory_space<vmem>>, vector<16x1xf32>
    %51 = vector.broadcast %50 : vector<16x1xf32> to vector<16x384xf32>
    %52 = arith.addf %49, %51 : vector<16x384xf32>
    %cst_32 = arith.constant 0.000000e+00 : f32
    %53 = vector.broadcast %cst_32 : f32 to vector<16x384xf32>
    %54 = arith.cmpf oge, %52, %53 : vector<16x384xf32>
    %55 = vector.broadcast %0 : f32 to vector<16x384xf32>
    %56 = arith.mulf %55, %52 : vector<16x384xf32>
    %57 = arith.select %54, %52, %56 : vector<16x384xi1>, vector<16x384xf32>
    %c25_i32_33 = arith.constant 25 : i32
    %58 = tpu.dynamic_rotate %57 by %c25_i32_33 dim 1 : vector<16x384xf32>, i32 -> vector<16x384xf32>
    %c0_34 = arith.constant 0 : index
    %c0_35 = arith.constant 0 : index
    %59 = vector.load %arg2[%c0_34, %c0_35] : memref<9x384xf32, #tpu.memory_space<vmem>>, vector<1x384xf32>
    %60 = vector.broadcast %59 : vector<1x384xf32> to vector<16x384xf32>
    %61 = arith.mulf %58, %60 : vector<16x384xf32>
    %c0_36 = arith.constant 0 : index
    %c0_37 = arith.constant 0 : index
    %62 = vector.load %arg10[%c0_36, %c0_37] : memref<144x384xf32, #tpu.memory_space<vmem>>, vector<16x384xf32>
    tpu.vector_store %arg10[%c0_36, %c0_37], %61 {strides = array<i32>} : memref<144x384xf32, #tpu.memory_space<vmem>>, vector<16x384xf32>,
    %c24_i32_38 = arith.constant 24 : i32
    %63 = tpu.dynamic_rotate %57 by %c24_i32_38 dim 1 : vector<16x384xf32>, i32 -> vector<16x384xf32>
    %c1_39 = arith.constant 1 : index
    %c0_40 = arith.constant 0 : index
    %64 = vector.load %arg2[%c1_39, %c0_40] : memref<9x384xf32, #tpu.memory_space<vmem>>, vector<1x384xf32>
    %65 = vector.broadcast %64 : vector<1x384xf32> to vector<16x384xf32>
    %66 = arith.mulf %63, %65 : vector<16x384xf32>
    %c16 = arith.constant 16 : index
    %c0_41 = arith.constant 0 : index
    %67 = vector.load %arg10[%c16, %c0_41] : memref<144x384xf32, #tpu.memory_space<vmem>>, vector<16x384xf32>
    tpu.vector_store %arg10[%c16, %c0_41], %66 {strides = array<i32>} : memref<144x384xf32, #tpu.memory_space<vmem>>, vector<16x384xf32>,
    %c23_i32_42 = arith.constant 23 : i32
    %68 = tpu.dynamic_rotate %57 by %c23_i32_42 dim 1 : vector<16x384xf32>, i32 -> vector<16x384xf32>
    %c2_43 = arith.constant 2 : index
    %c0_44 = arith.constant 0 : index
    %69 = vector.load %arg2[%c2_43, %c0_44] : memref<9x384xf32, #tpu.memory_space<vmem>>, vector<1x384xf32>
    %70 = vector.broadcast %69 : vector<1x384xf32> to vector<16x384xf32>
    %71 = arith.mulf %68, %70 : vector<16x384xf32>
    %c32 = arith.constant 32 : index
    %c0_45 = arith.constant 0 : index
    %72 = vector.load %arg10[%c32, %c0_45] : memref<144x384xf32, #tpu.memory_space<vmem>>, vector<16x384xf32>
    tpu.vector_store %arg10[%c32, %c0_45], %71 {strides = array<i32>} : memref<144x384xf32, #tpu.memory_space<vmem>>, vector<16x384xf32>,
    %c1_i32_46 = arith.constant 1 : i32
    %73 = tpu.dynamic_rotate %57 by %c1_i32_46 dim 1 : vector<16x384xf32>, i32 -> vector<16x384xf32>
    %c3_47 = arith.constant 3 : index
    %c0_48 = arith.constant 0 : index
    %74 = vector.load %arg2[%c3_47, %c0_48] : memref<9x384xf32, #tpu.memory_space<vmem>>, vector<1x384xf32>
    %75 = vector.broadcast %74 : vector<1x384xf32> to vector<16x384xf32>
    %76 = arith.mulf %73, %75 : vector<16x384xf32>
    %c48 = arith.constant 48 : index
    %c0_49 = arith.constant 0 : index
    %77 = vector.load %arg10[%c48, %c0_49] : memref<144x384xf32, #tpu.memory_space<vmem>>, vector<16x384xf32>
    tpu.vector_store %arg10[%c48, %c0_49], %76 {strides = array<i32>} : memref<144x384xf32, #tpu.memory_space<vmem>>, vector<16x384xf32>,
    %c64 = arith.constant 64 : index
    %c0_50 = arith.constant 0 : index
    %78 = vector.load %arg10[%c64, %c0_50] : memref<144x384xf32, #tpu.memory_space<vmem>>, vector<16x384xf32>
    tpu.vector_store %arg10[%c64, %c0_50], %57 {strides = array<i32>} : memref<144x384xf32, #tpu.memory_space<vmem>>, vector<16x384xf32>,
    %c383_i32_51 = arith.constant 383 : i32
    %79 = tpu.dynamic_rotate %57 by %c383_i32_51 dim 1 : vector<16x384xf32>, i32 -> vector<16x384xf32>
    %c5_52 = arith.constant 5 : index
    %c0_53 = arith.constant 0 : index
    %80 = vector.load %arg2[%c5_52, %c0_53] : memref<9x384xf32, #tpu.memory_space<vmem>>, vector<1x384xf32>
    %81 = vector.broadcast %80 : vector<1x384xf32> to vector<16x384xf32>
    %82 = arith.mulf %79, %81 : vector<16x384xf32>
    %c80 = arith.constant 80 : index
    %c0_54 = arith.constant 0 : index
    %83 = vector.load %arg10[%c80, %c0_54] : memref<144x384xf32, #tpu.memory_space<vmem>>, vector<16x384xf32>
    tpu.vector_store %arg10[%c80, %c0_54], %82 {strides = array<i32>} : memref<144x384xf32, #tpu.memory_space<vmem>>, vector<16x384xf32>,
    %c361_i32_55 = arith.constant 361 : i32
    %84 = tpu.dynamic_rotate %57 by %c361_i32_55 dim 1 : vector<16x384xf32>, i32 -> vector<16x384xf32>
    %c6_56 = arith.constant 6 : index
    %c0_57 = arith.constant 0 : index
    %85 = vector.load %arg2[%c6_56, %c0_57] : memref<9x384xf32, #tpu.memory_space<vmem>>, vector<1x384xf32>
    %86 = vector.broadcast %85 : vector<1x384xf32> to vector<16x384xf32>
    %87 = arith.mulf %84, %86 : vector<16x384xf32>
    %c96 = arith.constant 96 : index
    %c0_58 = arith.constant 0 : index
    %88 = vector.load %arg10[%c96, %c0_58] : memref<144x384xf32, #tpu.memory_space<vmem>>, vector<16x384xf32>
    tpu.vector_store %arg10[%c96, %c0_58], %87 {strides = array<i32>} : memref<144x384xf32, #tpu.memory_space<vmem>>, vector<16x384xf32>,
    %c360_i32_59 = arith.constant 360 : i32
    %89 = tpu.dynamic_rotate %57 by %c360_i32_59 dim 1 : vector<16x384xf32>, i32 -> vector<16x384xf32>
    %c7_60 = arith.constant 7 : index
    %c0_61 = arith.constant 0 : index
    %90 = vector.load %arg2[%c7_60, %c0_61] : memref<9x384xf32, #tpu.memory_space<vmem>>, vector<1x384xf32>
    %91 = vector.broadcast %90 : vector<1x384xf32> to vector<16x384xf32>
    %92 = arith.mulf %89, %91 : vector<16x384xf32>
    %c112 = arith.constant 112 : index
    %c0_62 = arith.constant 0 : index
    %93 = vector.load %arg10[%c112, %c0_62] : memref<144x384xf32, #tpu.memory_space<vmem>>, vector<16x384xf32>
    tpu.vector_store %arg10[%c112, %c0_62], %92 {strides = array<i32>} : memref<144x384xf32, #tpu.memory_space<vmem>>, vector<16x384xf32>,
    %c359_i32_63 = arith.constant 359 : i32
    %94 = tpu.dynamic_rotate %57 by %c359_i32_63 dim 1 : vector<16x384xf32>, i32 -> vector<16x384xf32>
    %c8_64 = arith.constant 8 : index
    %c0_65 = arith.constant 0 : index
    %95 = vector.load %arg2[%c8_64, %c0_65] : memref<9x384xf32, #tpu.memory_space<vmem>>, vector<1x384xf32>
    %96 = vector.broadcast %95 : vector<1x384xf32> to vector<16x384xf32>
    %97 = arith.mulf %94, %96 : vector<16x384xf32>
    %c128 = arith.constant 128 : index
    %c0_66 = arith.constant 0 : index
    %98 = vector.load %arg10[%c128, %c0_66] : memref<144x384xf32, #tpu.memory_space<vmem>>, vector<16x384xf32>
    tpu.vector_store %arg10[%c128, %c0_66], %97 {strides = array<i32>} : memref<144x384xf32, #tpu.memory_space<vmem>>, vector<16x384xf32>,
    %c0_67 = arith.constant 0 : index
    %c0_68 = arith.constant 0 : index
    %99 = vector.load %arg6[%c0_67, %c0_68] : memref<16x144xbf16, #tpu.memory_space<vmem>>, vector<16x144xbf16>
    %c0_69 = arith.constant 0 : index
    %c0_70 = arith.constant 0 : index
    %100 = vector.load %arg10[%c0_69, %c0_70] : memref<144x384xf32, #tpu.memory_space<vmem>>, vector<144x384xf32>
    %101 = arith.truncf %100 : vector<144x384xf32> to vector<144x384xbf16>
    %cst_71 = arith.constant dense<0.000000e+00> : vector<16x384xf32>
    %102 = tpu.matmul %99, %101, %cst_71 {dimension_numbers = #tpu.dot_dimension_numbers<[1], [0], [0], [1], [0, 0, 1, 1], [], []>} : vector<16x144xbf16>, vector<144x384xbf16>, vector<16x384xf32> -> vector<16x384xf32>
    %c0_72 = arith.constant 0 : index
    %c0_73 = arith.constant 0 : index
    %103 = vector.load %arg7[%c0_72, %c0_73] : memref<16x1xf32, #tpu.memory_space<vmem>>, vector<16x1xf32>
    %104 = vector.broadcast %103 : vector<16x1xf32> to vector<16x384xf32>
    %105 = arith.addf %102, %104 : vector<16x384xf32>
    %cst_74 = arith.constant 0.000000e+00 : f32
    %106 = vector.broadcast %cst_74 : f32 to vector<16x384xf32>
    %107 = arith.cmpf oge, %105, %106 : vector<16x384xf32>
    %108 = vector.broadcast %1 : f32 to vector<16x384xf32>
    %109 = arith.mulf %108, %105 : vector<16x384xf32>
    %110 = arith.select %107, %105, %109 : vector<16x384xi1>, vector<16x384xf32>
    %c0_75 = arith.constant 0 : index
    %c0_76 = arith.constant 0 : index
    %111 = vector.load %arg8[%c0_75, %c0_76] : memref<16x1xf32, #tpu.memory_space<vmem>>, vector<16x1xf32>
    %112 = vector.broadcast %111 : vector<16x1xf32> to vector<16x384xf32>
    %113 = arith.mulf %110, %112 : vector<16x384xf32>
    %cst_77 = arith.constant dense<0.000000e+00> : vector<384xf32>
    %114 = vector.multi_reduction <add>, %113, %cst_77 [0] : vector<16x384xf32> to vector<384xf32>
    %115 = vector.shape_cast %114 : vector<384xf32> to vector<1x384xf32>
    %116 = vector.broadcast %2 : f32 to vector<1x384xf32>
    %117 = arith.addf %115, %116 : vector<1x384xf32>
    %118 = math.tanh %117 : vector<1x384xf32>
    %119 = vector.shape_cast %118 : vector<1x384xf32> to vector<1x1x384xf32>
    %c0_78 = arith.constant 0 : index
    %c0_79 = arith.constant 0 : index
    %c0_80 = arith.constant 0 : index
    %120 = vector.load %arg9[%c0_78, %c0_79, %c0_80] : memref<1x1x384xf32, #tpu.memory_space<vmem>>, vector<1x1x384xf32>
    tpu.vector_store %arg9[%c0_78, %c0_79, %c0_80], %119 {strides = array<i32>} : memref<1x1x384xf32, #tpu.memory_space<vmem>>, vector<1x1x384xf32>,
    return
  }
  func.func @transform_0(%arg0: i32) -> i32 {
    %c0_i32 = arith.constant 0 : i32
    %c0_i32_0 = arith.constant 0 : i32
    return %c0_i32 : i32
  }
  func.func @transform_1(%arg0: i32) -> (i32, i32) {
    %c0_i32 = arith.constant 0 : i32
    %c0_i32_0 = arith.constant 0 : i32
    %c0_i32_1 = arith.constant 0 : i32
    return %c0_i32, %c0_i32_0 : i32, i32
  }
  func.func @transform_2(%arg0: i32) -> (i32, i32, i32) {
    %c0_i32 = arith.constant 0 : i32
    %c0_i32_0 = arith.constant 0 : i32
    %c0_i32_1 = arith.constant 0 : i32
    return %arg0, %c0_i32, %c0_i32_0 : i32, i32, i32
  }
  func.func @transform_3(%arg0: i32) -> (i32, i32) {
    %c0_i32 = arith.constant 0 : i32
    %c0_i32_0 = arith.constant 0 : i32
    %c0_i32_1 = arith.constant 0 : i32
    return %c0_i32, %c0_i32_0 : i32, i32
  }
  func.func @transform_4(%arg0: i32) -> (i32, i32) {
    %c0_i32 = arith.constant 0 : i32
    %c0_i32_0 = arith.constant 0 : i32
    %c0_i32_1 = arith.constant 0 : i32
    return %c0_i32, %c0_i32_0 : i32, i32
  }
  func.func @transform_5(%arg0: i32) -> (i32, i32) {
    %c0_i32 = arith.constant 0 : i32
    %c0_i32_0 = arith.constant 0 : i32
    %c0_i32_1 = arith.constant 0 : i32
    return %c0_i32, %c0_i32_0 : i32, i32
  }
  func.func @transform_6(%arg0: i32) -> (i32, i32) {
    %c0_i32 = arith.constant 0 : i32
    %c0_i32_0 = arith.constant 0 : i32
    %c0_i32_1 = arith.constant 0 : i32
    return %c0_i32, %c0_i32_0 : i32, i32
  }
  func.func @transform_7(%arg0: i32) -> (i32, i32) {
    %c0_i32 = arith.constant 0 : i32
    %c0_i32_0 = arith.constant 0 : i32
    %c0_i32_1 = arith.constant 0 : i32
    return %c0_i32, %c0_i32_0 : i32, i32
  }
  func.func @transform_8(%arg0: i32) -> (i32, i32, i32) {
    %c0_i32 = arith.constant 0 : i32
    %c0_i32_0 = arith.constant 0 : i32
    %c0_i32_1 = arith.constant 0 : i32
    return %arg0, %c0_i32, %c0_i32_0 : i32, i32, i32
  }
}

</mosaic_0001>

<bundles_post_ra>
// kernel: guide_nn_forward.1
= control target key start
LH: loop header
LB: loop body
LE: loop exit
PB: predicated region body
PF: predicated region fallthrough
CT: control target
= control target key end

     0   :  { %13 = vsyncpa [#allocation4], 0  ;;  %s1740_s27 = smov 0   ;;  %s2422_s0 = inlined_call_operand.vmem [shape: f32[3], index: 0, kind: input, shape index: {}]   ;;  %s2423_s1 = inlined_call_operand.vmem [shape: f32[9,384], index: 1, kind: input, shape index: {}]   ;;  %s2424_s2 = inlined_call_operand.vmem [shape: f32[2,3,384], index: 2, kind: input, shape index: {}]   ;;  %s2425_s3 = inlined_call_operand.vmem [shape: bf16[16,27], index: 3, kind: input, shape index: {}]   ;;  %s2426_s4 = inlined_call_operand.vmem [shape: f32[16,1], index: 4, kind: input, shape index: {}]   ;;  %s2427_s5 = inlined_call_operand.vmem [shape: bf16[16,144], index: 5, kind: input, shape index: {}]   ;;  %s2428_s6 = inlined_call_operand.vmem [shape: f32[16,1], index: 6, kind: input, shape index: {}]   ;;  %s2429_s7 = inlined_call_operand.vmem [shape: f32[16,1], index: 7, kind: input, shape index: {}]   ;;  %s2430_s8 = inlined_call_operand.vmem [shape: f32[2,1,384], index: 8, kind: output, shape index: {}]  }
   0x1 LB: > { %s1561_s28 = sadd.s32 4294967295, %s1679_s27   ;;  %p1563_p0 = scmp.ge.s32.totalorder %s1679_s27, 1  ;;  %s1679_s27 = sphi %s1740_s27, %s19_s27  }
   0x2   : > { %p223_p1 = scmp.lt.s32.totalorder %s1679_s27, 3  ;;  %s236_s9 = sshll.u32 %s2422_s0, 4  ;;  %s237_s9 = int_to_ptr.vmem [resolvable:$true] %s236_s9 }
   0x3   : > { %p1615_p3 = scmp.eq.s32.totalorder %s1561_s28, 0  ;;  %s1654_s11 = scalar_lea.vmem %s237_s9, 16 }
   0x4   : > { %p1751_p2 = pnand %p1563_p0, %p223_p1  ;;  %p1655_p6 = scmp.ne.s32.totalorder %s237_s9, %s1654_s11 }
   0x5   : > { %p1662_p10 = scmp.lt.s32.totalorder %s237_s9, %s237_s9  ;;  %p1663_p11 = scmp.lt.s32.totalorder %s1654_s11, %s1654_s11 }
   0x6   : > { %p1611_p4 = pneg %p1751_p2 }
   0x7   : > { %p1664_p12 = por %p1663_p11, %p1662_p10 }
   0x8   : > { %p1612_p5 = pnand %p1615_p3, %p1611_p4 }
   0xa   : > { %p1656_p7 = pneg %p1612_p5 }
   0xc   : > { %p1657_p8 = pnand %p1656_p7, %p1655_p6 }
   0xe   : > { %p1658_p9 = pneg %p1657_p8 }
  0x10   : > { %p1665_p13 = pnand %p1664_p12, %p1658_p9 }
  0x12   : > { %1668 = shalt.err (!%p1665_p13)
}
  0x13   : > { %s1681_s12 = smov [#allocation3]   ;;  %275 = sbr.rel (%p1751_p2) target bundleno = 908 (0x38c), region = 52 }
  0x14   : > { %1614 = dma.vmem_to_smem (!%p1612_p5), %s237_s9, 16, %s1681_s12, [#allocation4]  }
  0x1a   : > { %1674 = dma.done.wait (%p1615_p3), [#allocation4], 16  }
  0x1b   : > { %1676 = vsyncadd (%p1615_p3), [#allocation4], 4294967280 }
  0x1c   : > { %281 = sfence }
  0x1d   : > { %p309_p0 = scmp.lt.s32.totalorder %s1561_s28, 1  ;;  %s1682_s17 = smov 23   ;;  %v1689_v5 = vmov 0.0   ;;  %vm1691_vm0 = vmmov 0   ;;  %v2432_v6 = vmov 0   ;;  %v688_v7 = vld [vmem:[%s2426_s4] sm:$0xff]  ;;  %v2431_v9 = vlaneseq }
  0x1e   : > { %s1683_s18 = smov 24   ;;  %s1684_s19 = smov 1   ;;  %1597 = vmatprep.subr.bf16.mxu1 %v1689_v5  ;;  %1601 = vmatprep.mubr.msk.bf16.mxu1 %vm1691_vm0, %v1689_v5  ;;  %v689_v8 = vld [vmem:[%s2426_s4 + $0x8] sm:$0xff]  ;;  %vm709_vm9 = vcmask 1044480   ;;  %vm710_vm10 = vcmask 1045504   ;;  %vm705_vm11 = vcmask 220160  }
  0x1f   : > { %s2460_s28 = smov (!%p309_p0, %s1561_s28), 1  ;;  %s1685_s20 = smov 127   ;;  %754 = vmatprep.mubr.bf16.mxu0 %v2432_v6  ;;  %1639 = vset.pattern.permute.xlu0 %v2432_v6  ;;  %v1804_v10 = vshrl.u32 %v2431_v9, 7  ;;  %v1807_v11 = vand.u32 127, %v2431_v9 }
  0x20   : > { %s1605_s13 = smul.u32 12, %s2460_s28  ;;  %s1686_s21 = smov 25   ;;  %1640 = vset.pattern.permute.xlu1 %v2432_v6  ;;  %v1572_v13 = vld [vmem:[%s2423_s1 + $0x2] ss:$8 sm:$0x7] }
  0x21   : > { %s1687_s22 = smov 105   ;;  %s1688_s23 = smov 104   ;;  %2439 = vst [vmem:[#allocation6_spill] sm:$0xff] %v1804_v10  ;;  %v1810_v12 = vsub.s32 1, %v1804_v10  ;;  %vm412_vm1 = vcmp.lt.s32.totalorder %v1807_v11, 23  ;;  %vm458_vm2 = vcmp.lt.s32.totalorder %v1807_v11, 1 }
  0x22   : > { %s313_s16 = scalar_lea.vmem %s2424_s2, %s1605_s13  ;;  %s1690_s24 = smov 103   ;;  %v1820_v17 = vld [vmem:[%s2423_s1 + $0x3] ss:$8 sm:$0x7]  ;;  %vm369_vm3 = vcmp.lt.s32.totalorder %v1807_v11, 24  ;;  %v1836_v29 = vsub.s32 0, %v1804_v10 }
  0x23   : > { %v322_v0 = vld [vmem:[%s313_s16] sm:$0x77]  ;;  %v323_v2 = vld [vmem:[%s313_s16 + $0x8] sm:$0x7]  ;;  %v426_v16 = vrot.slane %v1572_v13, %v1810_v12  ;;  %v472_v23 = vrot.slane %v1820_v17, %v1810_v12  ;;  %v1839_v30 = vsub.s32 2, %v1804_v10  ;;  %vm508_vm4 = vcmp.lt.s32.totalorder %v1807_v11, 127 }
  0x24   : > { %406 = vrot.lane.b32.xlu1 %v322_v0, %s1682_s17  ;;  %500 = vst [vmem:[#allocation2 + $0x20] sm:$0x70] %v322_v0  ;;  %363 = vrot.lane.b32.xlu0 %v322_v0, %s1683_s18  ;;  %v326_v1 = vcombine.high %v322_v0, %v322_v0  ;;  %v495_v3 = vcombine.low %v322_v0, %v322_v0  ;;  %v1571_v18 = vld [vmem:[%s2423_s1 + $0x1] ss:$8 sm:$0x7]  ;;  %vm336_vm5 = vcmp.lt.s32.totalorder %v1807_v11, 25 }
  0x25   : > { %v496_v4 = vcombine.low %v323_v2, %v323_v2  ;;  %v383_v24 = vrot.slane %v1571_v18, %v1810_v12  ;;  %v1574_v25 = vld [vmem:[%s2423_s1 + $0x5] ss:$8 sm:$0x7]  ;;  %v422_v41 = vrot.slane %v1572_v13, %v1836_v29  ;;  %v430_v43 = vrot.slane %v1572_v13, %v1839_v30  ;;  %v1862_v53 = vld [vmem:[%s2423_s1] ss:$8 sm:$0x7] }
  0x26   : > { %499 = vst [vmem:[#allocation2 + $0x18] sm:$0x70] %v495_v3  ;;  %v522_v35 = vrot.slane %v1574_v25, %v1810_v12  ;;  %v379_v44 = vrot.slane %v1571_v18, %v1836_v29  ;;  %v387_v45 = vrot.slane %v1571_v18, %v1839_v30  ;;  %v518_v46 = vrot.slane %v1574_v25, %v1836_v29  ;;  %s319_s15 = sld [smem:[#allocation3]]  ;;  %s1569_s25 = sld [smem:[#allocation3 + $0x1]] }
  0x27   : > { %501 = vst [vmem:[#allocation2 + $0x28] sm:$0x70] %v496_v4  ;;  %v526_v50 = vrot.slane %v1574_v25, %v1839_v30  ;;  %v468_v51 = vrot.slane %v1820_v17, %v1836_v29  ;;  %v476_v52 = vrot.slane %v1820_v17, %v1839_v30  ;;  %v349_v62 = vrot.slane %v1862_v53, %v1810_v12  ;;  %s1570_s26 = sld [smem:[#allocation3 + $0x2]] }
  0x28   : > { %452 = vrot.lane.b32.xlu0 %v322_v0, %s1684_s19  ;;  %408 = vrot.lane.b32.xlu1 %v326_v1, %s1682_s17  ;;  %vm554_vm6 = vcmp.lt.s32.totalorder %v1807_v11, 105  ;;  %vm597_vm7 = vcmp.lt.s32.totalorder %v1807_v11, 104  ;;  %vm640_vm8 = vcmp.lt.s32.totalorder %v1807_v11, 103 }
  0x2c   : > { %454 = vrot.lane.b32.xlu1 %v326_v1, %s1684_s19  ;;  %365 = vrot.lane.b32.xlu0 %v326_v1, %s1683_s18 }
  0x30   : > { %506 = vrot.lane.b32.xlu1 %v323_v2, %s1685_s20  ;;  %504 = vrot.lane.b32.xlu0 %v326_v1, %s1685_s20 }
  0x34   : > { %410 = vrot.lane.b32.xlu1 %v323_v2, %s1682_s17  ;;  %367 = vrot.lane.b32.xlu0 %v323_v2, %s1683_s18 }
  0x38   : > { %502 = vrot.lane.b32.xlu1 %v322_v0, %s1685_s20  ;;  %456 = vrot.lane.b32.xlu0 %v323_v2, %s1684_s19 }
  0x3c   : > { %330 = vrot.lane.b32.xlu1 %v326_v1, %s1686_s21  ;;  %328 = vrot.lane.b32.xlu0 %v322_v0, %s1686_s21 }
  0x40   : > { %552 = vrot.lane.b32.xlu1 %v323_v2, %s1687_s22  ;;  %550 = vrot.lane.b32.xlu0 %v326_v1, %s1687_s22 }
  0x44   : > { %595 = vrot.lane.b32.xlu1 %v323_v2, %s1688_s23  ;;  %593 = vrot.lane.b32.xlu0 %v326_v1, %s1688_s23 }
  0x48   : > { %548 = vrot.lane.b32.xlu1 %v322_v0, %s1687_s22  ;;  %332 = vrot.lane.b32.xlu0 %v323_v2, %s1686_s21 }
  0x4c   : > { %636 = vrot.lane.b32.xlu1 %v326_v1, %s1690_s24  ;;  %591 = vrot.lane.b32.xlu0 %v322_v0, %s1688_s23 }
  0x50   : > { %634 = vrot.lane.b32.xlu1 %v322_v0, %s1690_s24  ;;  %638 = vrot.lane.b32.xlu0 %v323_v2, %s1690_s24 }
  0x54   : > { %692 = vperm.xlu0 %1639, %v688_v7   ;;  %697 = vperm.xlu1 %1640, %v689_v8  }
  0x96   : > { %v407_v14 = vpop.permute.xlu1 %406  ;;  %v364_v15 = vpop.permute.xlu0 %363 }
  0x9a   : > { %v453_v19 = vpop.permute.xlu0 %452  ;;  %v409_v20 = vpop.permute.xlu1 %408 }
  0x9b   : > { %v414_v21 = vsel %vm412_vm1, %v407_v14, %v409_v20 }
  0x9c   : > { %v435_v22 = vmul.f32 %v426_v16, %v414_v21 }
  0x9e   : > { %v441_v26 = vrot.slane %v435_v22, 2  ;;  %v455_v27 = vpop.permute.xlu1 %454  ;;  %v366_v28 = vpop.permute.xlu0 %365 }
  0x9f   : > { %v460_v31 = vsel %vm458_vm2, %v453_v19, %v455_v27  ;;  %v371_v32 = vsel %vm369_vm3, %v364_v15, %v366_v28 }
  0xa0   : > { %447 = vst [vmem:[#allocation2 + $0x20] ss:$-20 sps:$4 sm:$0xc1] %v441_v26   ;;  %v481_v33 = vmul.f32 %v472_v23, %v460_v31  ;;  %v392_v34 = vmul.f32 %v383_v24, %v371_v32  ;;  %v1576_v31 = vld [vmem:[%s2423_s1 + $0x7] ss:$8 sm:$0x7] }
  0xa2   : > { %v487_v36 = vrot.slane %v481_v33, 7  ;;  %v398_v37 = vrot.slane %v392_v34, 5  ;;  %v507_v38 = vpop.permute.xlu1 %506  ;;  %v505_v39 = vpop.permute.xlu0 %504 }
  0xa3   : > { %v509_v40 = vsel %vm508_vm4, %v505_v39, %v507_v38 }
  0xa4   : > { %493 = vst [vmem:[#allocation2 + $0x20] sm:$0xe] %v487_v36  ;;  %404 = vst [vmem:[#allocation2 + $0x8] sm:$0x38] %v398_v37  ;;  %v531_v42 = vmul.f32 %v522_v35, %v509_v40  ;;  %v611_v36 = vrot.slane %v1576_v31, %v1810_v12 }
  0xa6   : > { %v537_v47 = vrot.slane %v531_v42, 1  ;;  %v411_v48 = vpop.permute.xlu1 %410  ;;  %v368_v49 = vpop.permute.xlu0 %367 }
  0xa7   : > { %v413_v54 = vsel %vm412_vm1, %v409_v20, %v411_v48  ;;  %v415_v55 = vsel %vm412_vm1, %v411_v48, %v407_v14  ;;  %v370_v56 = vsel %vm369_vm3, %v366_v28, %v368_v49  ;;  %v372_v57 = vsel %vm369_vm3, %v368_v49, %v364_v15  ;;  %v1575_v20 = vld [vmem:[%s2423_s1 + $0x6] ss:$8 sm:$0x7] }
  0xa8   : > { %543 = vst [vmem:[#allocation2 + $0x38] ss:$-20 sps:$4 sm:$0x83] %v537_v47   ;;  %v434_v58 = vmul.f32 %v422_v41, %v415_v55  ;;  %v436_v59 = vmul.f32 %v430_v43, %v413_v54  ;;  %v391_v60 = vmul.f32 %v379_v44, %v372_v57  ;;  %v393_v61 = vmul.f32 %v387_v45, %v370_v56 }
  0xa9   : > { %v568_v28 = vrot.slane %v1575_v20, %v1810_v12  ;;  %v564_v41 = vrot.slane %v1575_v20, %v1836_v29  ;;  %v572_v43 = vrot.slane %v1575_v20, %v1839_v30  ;;  %v345_v44 = vrot.slane %v1862_v53, %v1836_v29 }
  0xaa   : > { %v440_v63 = vrot.slane %v434_v58, 2  ;;  %v442_v0 = vrot.slane %v436_v59, 2  ;;  %v397_v1 = vrot.slane %v391_v60, 5  ;;  %v399_v2 = vrot.slane %v393_v61, 5  ;;  %v503_v3 = vpop.permute.xlu1 %502  ;;  %v457_v4 = vpop.permute.xlu0 %456 }
  0xab   : > { %v510_v7 = vsel %vm508_vm4, %v503_v3, %v505_v39  ;;  %v511_v8 = vsel %vm508_vm4, %v507_v38, %v503_v3  ;;  %v459_v13 = vsel %vm458_vm2, %v455_v27, %v457_v4  ;;  %v461_v14 = vsel %vm458_vm2, %v457_v4, %v453_v19 }
  0xac   : > { %446 = vst [vmem:[#allocation2 + $0x18] ss:$-20 sps:$4 sm:$0xc1] %v440_v63   ;;  %448 = vst [vmem:[#allocation2 + $0x28] ss:$-20 sps:$4 sm:$0xc1] %v442_v0   ;;  %v530_v15 = vmul.f32 %v518_v46, %v510_v7  ;;  %v532_v16 = vmul.f32 %v526_v50, %v511_v8  ;;  %v480_v17 = vmul.f32 %v468_v51, %v461_v14 }
  0xad   : > { %403 = vst [vmem:[#allocation2] sm:$0x38] %v397_v1  ;;  %405 = vst [vmem:[#allocation2 + $0x10] sm:$0x38] %v399_v2  ;;  %v482_v18 = vmul.f32 %v476_v52, %v459_v13  ;;  %v353_v45 = vrot.slane %v1862_v53, %v1839_v30  ;;  %v607_v52 = vrot.slane %v1576_v31, %v1836_v29 }
  0xae   : > { %v536_v21 = vrot.slane %v530_v15, 1  ;;  %v538_v22 = vrot.slane %v532_v16, 1  ;;  %v486_v23 = vrot.slane %v480_v17, 7  ;;  %v331_v25 = vpop.permute.xlu1 %330  ;;  %v329_v26 = vpop.permute.xlu0 %328  ;;  %v615_v54 = vrot.slane %v1576_v31, %v1839_v30 }
  0xaf   : > { %v488_v24 = vrot.slane %v482_v18, 7  ;;  %v338_v19 = vsel %vm336_vm5, %v329_v26, %v331_v25  ;;  %v674_v47 = vld [vmem:[#allocation2 + $0x20] sm:$0xff] }
  0xb0   : > { %542 = vst [vmem:[#allocation2 + $0x30] ss:$-20 sps:$4 sm:$0x83] %v536_v21   ;;  %544 = vst [vmem:[#allocation2 + $0x40] ss:$-20 sps:$4 sm:$0x83] %v538_v22   ;;  %v358_v27 = vmul.f32 %v349_v62, %v338_v19 }
  0xb1   : > { %492 = vst [vmem:[#allocation2 + $0x18] sm:$0xe] %v486_v23  ;;  %494 = vst [vmem:[#allocation2 + $0x28] sm:$0xe] %v488_v24 }
  0xb2   : > { %361 = vst [vmem:[#allocation2 + $0x8] sm:$0x7] %v358_v27  ;;  %v553_v32 = vpop.permute.xlu1 %552  ;;  %v551_v33 = vpop.permute.xlu0 %550  ;;  %v1577_v62 = vld [vmem:[%s2423_s1 + $0x18] ss:$8 sm:$0x7] }
  0xb3   : > { %v555_v34 = vsel %vm554_vm6, %v551_v33, %v553_v32  ;;  %v650_v7 = vrot.slane %v1577_v62, %v1836_v29  ;;  %v654_v14 = vrot.slane %v1577_v62, %v1810_v12  ;;  %v658_v15 = vrot.slane %v1577_v62, %v1839_v30 }
  0xb4   : > { %v577_v35 = vmul.f32 %v568_v28, %v555_v34  ;;  %v1693_v34 = vmov 65535  }
  0xb6   : > { %v583_v37 = vrot.slane %v577_v35, 6  ;;  %v596_v38 = vpop.permute.xlu1 %595  ;;  %v594_v39 = vpop.permute.xlu0 %593  ;;  %v711_v35 = vsel %vm709_vm9, 4294967295, %v1693_v34 }
  0xb7   : > { %v598_v40 = vsel %vm597_vm7, %v594_v39, %v596_v38 }
  0xb8   : > { %589 = vst [vmem:[#allocation2 + $0x38] sm:$0x1c] %v583_v37  ;;  %v620_v42 = vmul.f32 %v611_v36, %v598_v40  ;;  %v673_v19 = vld [vmem:[#allocation2 + $0x18] sm:$0xff]  ;;  %v675_v31 = vld [vmem:[#allocation2 + $0x28] sm:$0xff]  ;;  %v712_v37 = vsel %vm710_vm10, %v711_v35, 0  ;;  %vm1311_vm10 = vcmask 130048  }
  0xb9   : > { %v671_v46 = vld [vmem:[#allocation2 + $0x8] sm:$0xff] }
  0xba   : > { %v626_v48 = vrot.slane %v620_v42, 3  ;;  %v549_v49 = vpop.permute.xlu1 %548  ;;  %v333_v50 = vpop.permute.xlu0 %332  ;;  %v683_v51 = vpack.c.bf16 %v674_v47, %v671_v46 }
  0xbb   : > { %v556_v55 = vsel %vm554_vm6, %v549_v49, %v551_v33  ;;  %v557_v56 = vsel %vm554_vm6, %v553_v32, %v549_v49  ;;  %v337_v57 = vsel %vm336_vm5, %v331_v25, %v333_v50  ;;  %v339_v53 = vsel %vm336_vm5, %v333_v50, %v329_v26 }
  0xbc   : > { %632 = vst [vmem:[#allocation2 + $0x38] sm:$0xe0] %v626_v48  ;;  %v576_v58 = vmul.f32 %v564_v41, %v556_v55  ;;  %v578_v59 = vmul.f32 %v572_v43, %v557_v56  ;;  %v357_v60 = vmul.f32 %v345_v44, %v339_v53  ;;  %v359_v61 = vmul.f32 %v353_v45, %v337_v57 }
  0xbd   : > { %722 = vmatprep.subr.bf16.mxu0 %v683_v51  ;;  %v812_v51 = vstv %s319_s15 }
  0xbe   : > { %v582_v63 = vrot.slane %v576_v58, 6  ;;  %v584_v0 = vrot.slane %v578_v59, 6  ;;  %360 = vst [vmem:[#allocation2] sm:$0x7] %v357_v60  ;;  %362 = vst [vmem:[#allocation2 + $0x10] sm:$0x7] %v359_v61  ;;  %v637_v1 = vpop.permute.xlu1 %636  ;;  %v592_v2 = vpop.permute.xlu0 %591 }
  0xbf   : > { %v599_v3 = vsel %vm597_vm7, %v592_v2, %v594_v39  ;;  %v600_v4 = vsel %vm597_vm7, %v596_v38, %v592_v2 }
  0xc0   : > { %588 = vst [vmem:[#allocation2 + $0x30] sm:$0x1c] %v582_v63  ;;  %590 = vst [vmem:[#allocation2 + $0x40] sm:$0x1c] %v584_v0  ;;  %v619_v8 = vmul.f32 %v607_v52, %v599_v3  ;;  %v621_v13 = vmul.f32 %v615_v54, %v600_v4 }
  0xc2   : > { %v625_v16 = vrot.slane %v619_v8, 3  ;;  %v627_v17 = vrot.slane %v621_v13, 3  ;;  %v635_v18 = vpop.permute.xlu1 %634  ;;  %v639_v20 = vpop.permute.xlu0 %638 }
  0xc3   : > { %v642_v21 = vsel %vm640_vm8, %v635_v18, %v637_v1  ;;  %v641_v22 = vsel %vm640_vm8, %v637_v1, %v639_v20  ;;  %v643_v23 = vsel %vm640_vm8, %v639_v20, %v635_v18  ;;  %v677_v36 = vld [vmem:[#allocation2 + $0x38] sm:$0xff] }
  0xc4   : > { %631 = vst [vmem:[#allocation2 + $0x30] sm:$0xe0] %v625_v16  ;;  %633 = vst [vmem:[#allocation2 + $0x40] sm:$0xe0] %v627_v17  ;;  %v662_v24 = vmul.f32 %v650_v7, %v642_v21  ;;  %v663_v25 = vmul.f32 %v654_v14, %v641_v22  ;;  %v664_v26 = vmul.f32 %v658_v15, %v643_v23  ;;  %v1645_v21 = vld [vmem:[%s2427_s5 + $0x4] ss:$8 sps:$4 sm:$0xff]  }
  0xc5   : > { %v670_v27 = vld [vmem:[#allocation2] sm:$0xff]  ;;  %v672_v28 = vld [vmem:[#allocation2 + $0x10] sm:$0xff]  ;;  %v1291_v23 = vld [vmem:[%s2428_s6 + $0x8] sm:$0xff] }
  0xc6   : > { %665 = vst [vmem:[#allocation2 + $0x48] sm:$0x7] %v662_v24  ;;  %666 = vst [vmem:[#allocation2 + $0x50] sm:$0x7] %v663_v25  ;;  %v682_v32 = vpack.c.bf16 %v673_v19, %v670_v27  ;;  %v684_v33 = vpack.c.bf16 %v675_v31, %v672_v28  ;;  %v1290_v22 = vld [vmem:[%s2428_s6] sm:$0xff]  ;;  %v1419_v25 = vld [vmem:[%s2429_s7 + $0x8] sm:$0xff] }
  0xc7   : > { %667 = vst [vmem:[#allocation2 + $0x58] sm:$0x7] %v664_v26  ;;  %v1418_v24 = vld [vmem:[%s2429_s7] sm:$0xff] }
  0xc8   : > { %723 = vmatpush1.bf16.msra.mxu0 %v682_v32  ;;  %1598 = vmatpush3.bf16.msra.mxu1 %v684_v33 }
  0xc9   : > { %1599 = vmatprep.subr.bf16.mxu1 %v1689_v5  ;;  %v1644_v5 = vld [vmem:[%s2425_s3] sm:$0xff]  }
  0xcb   : > { %v678_v38 = vld [vmem:[#allocation2 + $0x40] sm:$0xff]  ;;  %v676_v39 = vld [vmem:[#allocation2 + $0x30] sm:$0xff] }
  0xcd   : > { %v680_v40 = vld [vmem:[#allocation2 + $0x50] sm:$0x7]  ;;  %v679_v42 = vld [vmem:[#allocation2 + $0x48] sm:$0x7] }
  0xce   : > { %v681_v41 = vld [vmem:[#allocation2 + $0x58] sm:$0x7]  ;;  %v686_v43 = vpack.c.bf16 %v680_v40, %v677_v36  ;;  %v685_v45 = vpack.c.bf16 %v679_v42, %v676_v39  ;;  %v843_v39 = vld [vmem:[%s2423_s1] ss:$8 sm:$0x7] }
  0xcf   : > { %v687_v44 = vpack.c.bf16 %v681_v41, %v678_v38  ;;  %v848_v41 = vrot.slane %v843_v39, %v1836_v29  ;;  %v852_v9 = vrot.slane %v843_v39, %v1810_v12 }
  0xd0   : > { %v717_v46 = vand.u32 %v712_v37, %v686_v43  ;;  %v714_v48 = vand.u32 %v712_v37, %v685_v45  ;;  %v2095_v43 = vld [vmem:[%s2423_s1 + $0x1] ss:$8 sm:$0x7] }
  0xd1   : > { %v720_v47 = vand.u32 %v712_v37, %v687_v44 }
  0xd2   : > { %724 = vmatprep.subr.bf16.mxu0 %v717_v46 }
  0xd3   : > { %1600 = vmatpush3.bf16.msra.mxu1 %v720_v47  ;;  %725 = vmatpush1.bf16.msra.mxu0 %v714_v48  ;;  %v693_v49 = vpop.permute.xlu0 %692  ;;  %v698_v52 = vpop.permute.xlu1 %697  ;;  %v895_v47 = vrot.slane %v2095_v43, %v1836_v29 }
  0xd4   : > { %1358 = vmatprep.subr.bf16.mxu1 %v2432_v6  ;;  %v856_v6 = vrot.slane %v843_v39, %v1839_v30  ;;  %v899_v39 = vrot.slane %v2095_v43, %v1810_v12 }
  0xd6   : > { %1602 = vmatmul.mubr.msk.bf16.vlgmr.msra.gmra.mrb[0].mxu1 %vm705_vm11, %v1644_v5  ;;  %1579 = vmatmul.mubr.msk.bf16.vlgmr.msra.gmra.mrb[0].mxu0 %vm705_vm11, %v1644_v5  ;;  %v2109_v5 = vld [vmem:[%s2423_s1 + $0x2] ss:$8 sm:$0x7] }
  0xd7   : > { %1590 = vmatprep.mubr.msk.bf16.mxu0 %vm1311_vm10, %v1645_v21  ;;  %1591 = vmatprep.mubr.msk.bf16.mxu1 %vm1311_vm10, %v1645_v21  ;;  %v2182_v21 = vld [vmem:[%s2423_s1 + $0x6] ss:$8 sm:$0x7] }
 0x1a9   : > { %v799_v50 = vpop.f32.mrb[0].mxu1  ;;  %v756_v55 = vpop.f32.mrb[0].mxu0 }
 0x1aa   : > { %v800_v54 = vadd.f32 %v799_v50, %v693_v49  ;;  %v1603_v56 = vpop.f32.mrb[1].mxu1  ;;  %v757_v57 = vadd.f32 %v756_v55, %v693_v49  ;;  %v758_v53 = vpop.f32.mrb[1].mxu0  ;;  %v942_v55 = vrot.slane %v2109_v5, %v1836_v29 }
 0x1ab   : > { %v802_v58 = vpop.f32.mrb[2].mxu1  ;;  %v759_v60 = vadd.f32 %v758_v53, %v693_v49  ;;  %v760_v62 = vpop.f32.mrb[2].mxu0 }
 0x1ac   : > { %vm808_vm12 = vcmp.ge.f32.partialorder %v800_v54, 0.0  ;;  %v815_v59 = vmul.f32 %v812_v51, %v800_v54  ;;  %v803_v61 = vadd.f32 %v802_v58, %v698_v52  ;;  %v1604_v63 = vpop.f32.mrb[3].mxu1  ;;  %vm806_vm13 = vcmp.ge.f32.partialorder %v757_v57, 0.0  ;;  %v762_v2 = vpop.f32.mrb[3].mxu0 }
 0x1ad   : > { %v813_v0 = vmul.f32 %v812_v51, %v757_v57  ;;  %v761_v1 = vadd.f32 %v760_v62, %v698_v52  ;;  %vm807_vm14 = vcmp.ge.f32.partialorder %v759_v60, 0.0  ;;  %v814_v4 = vmul.f32 %v812_v51, %v759_v60 }
 0x1ae   : > { %v1937_v3 = vsel %vm808_vm12, %v800_v54, %v815_v59  ;;  %vm811_vm15 = vcmp.ge.f32.partialorder %v803_v61, 0.0  ;;  %v818_v8 = vmul.f32 %v812_v51, %v803_v61  ;;  %v763_v15 = vadd.f32 %v762_v2, %v698_v52 }
 0x1af   : > { %v1939_v7 = vsel %vm806_vm13, %v757_v57, %v813_v0  ;;  %vm809_vm0 = vcmp.ge.f32.partialorder %v761_v1, 0.0  ;;  %v816_v13 = vmul.f32 %v812_v51, %v761_v1  ;;  %833 = vrot.lane.b32.xlu1 %v1937_v3, %s1686_s21  ;;  %v1943_v14 = vsel %vm807_vm14, %v759_v60, %v814_v4  ;;  %v2134_v57 = vld [vmem:[%s2423_s1 + $0x3] ss:$8 sm:$0x7] }
 0x1b0   : > { %v1945_v16 = vsel %vm811_vm15, %v803_v61, %v818_v8  ;;  %vm810_vm9 = vcmp.ge.f32.partialorder %v763_v15, 0.0  ;;  %v817_v18 = vmul.f32 %v812_v51, %v763_v15  ;;  %v989_v62 = vrot.slane %v2134_v57, %v1836_v29  ;;  %v2159_v0 = vld [vmem:[%s2423_s1 + $0x5] ss:$8 sm:$0x7] }
 0x1b1   : > { %v1947_v17 = vsel %vm809_vm0, %v761_v1, %v816_v13  ;;  %835 = vrot.lane.b32.xlu0 %v1945_v16, %s1686_s21 }
 0x1b2   : > { %v1953_v20 = vsel %vm810_vm9, %v763_v15, %v817_v18  ;;  %v1050_v15 = vrot.slane %v2159_v0, %v1839_v30 }
 0x1b3   : > { %880 = vrot.lane.b32.xlu1 %v1937_v3, %s1683_s18 }
 0x1b5   : > { %882 = vrot.lane.b32.xlu0 %v1945_v16, %s1683_s18 }
 0x1b7   : > { %927 = vrot.lane.b32.xlu1 %v1937_v3, %s1682_s17 }
 0x1b9   : > { %929 = vrot.lane.b32.xlu0 %v1945_v16, %s1682_s17 }
 0x1bb   : > { %974 = vrot.lane.b32.xlu1 %v1937_v3, %s1684_s19 }
 0x1bd   : > { %976 = vrot.lane.b32.xlu0 %v1945_v16, %s1684_s19 }
 0x1bf   : > { %1027 = vrot.lane.b32.xlu1 %v1937_v3, %s1685_s20 }
 0x1c1   : > { %1029 = vrot.lane.b32.xlu0 %v1945_v16, %s1685_s20 }
 0x1c3   : > { %1074 = vrot.lane.b32.xlu1 %v1937_v3, %s1687_s22 }
 0x1c5   : > { %1076 = vrot.lane.b32.xlu0 %v1945_v16, %s1687_s22 }
 0x1c7   : > { %1121 = vrot.lane.b32.xlu1 %v1937_v3, %s1688_s23 }
 0x1c9   : > { %1123 = vrot.lane.b32.xlu0 %v1945_v16, %s1688_s23 }
 0x1cb   : > { %825 = vrot.lane.b32.xlu1 %v1939_v7, %s1686_s21 }
 0x1cd   : > { %827 = vrot.lane.b32.xlu0 %v1947_v17, %s1686_s21 }
 0x1cf   : > { %872 = vrot.lane.b32.xlu1 %v1939_v7, %s1683_s18 }
 0x1d1   : > { %874 = vrot.lane.b32.xlu0 %v1947_v17, %s1683_s18 }
 0x1d3   : > { %919 = vrot.lane.b32.xlu1 %v1939_v7, %s1682_s17 }
 0x1d5   : > { %921 = vrot.lane.b32.xlu0 %v1947_v17, %s1682_s17 }
 0x1d7   : > { %966 = vrot.lane.b32.xlu1 %v1939_v7, %s1684_s19 }
 0x1d9   : > { %968 = vrot.lane.b32.xlu0 %v1947_v17, %s1684_s19 }
 0x1db   : > { %1019 = vrot.lane.b32.xlu1 %v1939_v7, %s1685_s20 }
 0x1dd   : > { %1021 = vrot.lane.b32.xlu0 %v1947_v17, %s1685_s20 }
 0x1df   : > { %1066 = vrot.lane.b32.xlu1 %v1939_v7, %s1687_s22 }
 0x1e1   : > { %1068 = vrot.lane.b32.xlu0 %v1947_v17, %s1687_s22 }
 0x1e3   : > { %1113 = vrot.lane.b32.xlu1 %v1939_v7, %s1688_s23 }
 0x1e5   : > { %1115 = vrot.lane.b32.xlu0 %v1947_v17, %s1688_s23 }
 0x1e7   : > { %829 = vrot.lane.b32.xlu1 %v1943_v14, %s1686_s21 }
 0x1e9   : > { %831 = vrot.lane.b32.xlu0 %v1953_v20, %s1686_s21 }
 0x1eb   : > { %876 = vrot.lane.b32.xlu1 %v1943_v14, %s1683_s18 }
 0x1ed   : > { %878 = vrot.lane.b32.xlu0 %v1953_v20, %s1683_s18 }
 0x1ef   : > { %923 = vrot.lane.b32.xlu1 %v1943_v14, %s1682_s17 }
 0x1f1   : > { %925 = vrot.lane.b32.xlu0 %v1953_v20, %s1682_s17 }
 0x1f3   : > { %970 = vrot.lane.b32.xlu1 %v1943_v14, %s1684_s19 }
 0x1f5   : > { %972 = vrot.lane.b32.xlu0 %v1953_v20, %s1684_s19 }
 0x1f7   : > { %1168 = vrot.lane.b32.xlu1 %v1937_v3, %s1690_s24 }
 0x1f9   : > { %1170 = vrot.lane.b32.xlu0 %v1945_v16, %s1690_s24 }
 0x1fb   : > { %1023 = vrot.lane.b32.xlu1 %v1943_v14, %s1685_s20 }
 0x1fd   : > { %1025 = vrot.lane.b32.xlu0 %v1953_v20, %s1685_s20 }
 0x1ff   : > { %1070 = vrot.lane.b32.xlu1 %v1943_v14, %s1687_s22 }
 0x201   : > { %1072 = vrot.lane.b32.xlu0 %v1953_v20, %s1687_s22 }
 0x203   : > { %1117 = vrot.lane.b32.xlu1 %v1943_v14, %s1688_s23 }
 0x205   : > { %1119 = vrot.lane.b32.xlu0 %v1953_v20, %s1688_s23 }
 0x207   : > { %1164 = vrot.lane.b32.xlu1 %v1943_v14, %s1690_s24 }
 0x209   : > { %1166 = vrot.lane.b32.xlu0 %v1953_v20, %s1690_s24 }
 0x20b   : > { %1160 = vrot.lane.b32.xlu1 %v1939_v7, %s1690_s24 }
 0x20d   : > { %1162 = vrot.lane.b32.xlu0 %v1947_v17, %s1690_s24  ;;  %s1606_s24 = smul.u32 3, %s2460_s28 }
 0x20f   : > { %1294 = vperm.xlu1 %1640, %v1290_v22   ;;  %s317_s9 = scalar_lea.vmem %s2430_s8, %s1606_s24 }
 0x211   : > { %1299 = vperm.xlu0 %1639, %v1291_v23  }
 0x213   : > { %1422 = vperm.xlu1 %1640, %v1418_v24  }
 0x215   : > { %1427 = vperm.xlu0 %1639, %v1419_v25  }
 0x221   : > { %v2060_v26 = vpop.permute.xlu1 %833 }
 0x223   : > { %v2062_v19 = vpop.permute.xlu0 %835 }
 0x225   : > { %v2064_v27 = vpop.permute.xlu1 %880 }
 0x227   : > { %v2066_v28 = vpop.permute.xlu0 %882 }
 0x229   : > { %v2068_v31 = vpop.permute.xlu1 %927 }
 0x22b   : > { %v2070_v32 = vpop.permute.xlu0 %929 }
 0x22d   : > { %v2072_v33 = vpop.permute.xlu1 %974 }
 0x22f   : > { %v2074_v34 = vpop.permute.xlu0 %976 }
 0x231   : > { %v2076_v35 = vpop.permute.xlu1 %1027 }
 0x233   : > { %v2078_v36 = vpop.permute.xlu0 %1029 }
 0x235   : > { %v2080_v37 = vpop.permute.xlu1 %1074 }
 0x237   : > { %v2082_v38 = vpop.permute.xlu0 %1076 }
 0x239   : > { %v2087_v40 = vpop.permute.xlu1 %1121 }
 0x23a   : > { %2440 = vst [vmem:[#allocation7_spill] sm:$0xff] %v2087_v40 }
 0x23b   : > { %v2090_v42 = vpop.permute.xlu0 %1123 }
 0x23d   : > { %v826_v44 = vpop.permute.xlu1 %825 }
 0x23e   : > { %v841_v45 = vsel %vm336_vm5, %v2060_v26, %v826_v44 }
 0x23f   : > { %v2100_v46 = vmul.f32 %v848_v41, %v841_v45  ;;  %v2104_v48 = vpop.permute.xlu0 %827  ;;  %v1097_v45 = vrot.slane %v2182_v21, %v1839_v30 }
 0x240   : > { %v842_v49 = vsel %vm336_vm5, %v2062_v19, %v2104_v48 }
 0x241   : > { %866 = vst [vmem:[#allocation2] sm:$0xff] %v2100_v46  ;;  %v2116_v50 = vpop.permute.xlu1 %872  ;;  %v2118_v51 = vmul.f32 %v848_v41, %v842_v49  ;;  %v2205_v49 = vld [vmem:[%s2423_s1 + $0x7] ss:$8 sm:$0x7] }
 0x242   : > { %v888_v52 = vsel %vm369_vm3, %v2064_v27, %v2116_v50 }
 0x243   : > { %v2124_v54 = vmul.f32 %v895_v47, %v888_v52  ;;  %869 = vst [vmem:[#allocation2 + $0x18] sm:$0xff] %v2118_v51  ;;  %v2129_v56 = vpop.permute.xlu0 %874 }
 0x244   : > { %v889_v53 = vsel %vm369_vm3, %v2066_v28, %v2129_v56 }
 0x245   : > { %913 = vst [vmem:[#allocation2 + $0x30] sm:$0xff] %v2124_v54  ;;  %v2141_v58 = vpop.permute.xlu1 %919  ;;  %v2143_v59 = vmul.f32 %v895_v47, %v889_v53 }
 0x246   : > { %v935_v60 = vsel %vm412_vm1, %v2068_v31, %v2141_v58 }
 0x247   : > { %v2149_v61 = vmul.f32 %v942_v55, %v935_v60  ;;  %916 = vst [vmem:[#allocation2 + $0x48] sm:$0xff] %v2143_v59  ;;  %v2154_v63 = vpop.permute.xlu0 %921 }
 0x248   : > { %v936_v1 = vsel %vm412_vm1, %v2070_v32, %v2154_v63 }
 0x249   : > { %v2165_v2 = vpop.permute.xlu1 %966  ;;  %v2167_v4 = vmul.f32 %v942_v55, %v936_v1  ;;  %v1144_v1 = vrot.slane %v2205_v49, %v1839_v30 }
 0x24a   : > { %v982_v8 = vsel %vm458_vm2, %v2072_v33, %v2165_v2 }
 0x24b   : > { %v2173_v13 = vmul.f32 %v989_v62, %v982_v8  ;;  %v2177_v18 = vpop.permute.xlu0 %968 }
 0x24c   : > { %v983_v22 = vsel %vm458_vm2, %v2074_v34, %v2177_v18 }
 0x24d   : > { %v2188_v23 = vpop.permute.xlu1 %1019  ;;  %v2190_v24 = vmul.f32 %v989_v62, %v983_v22 }
 0x24e   : > { %v1035_v25 = vsel %vm508_vm4, %v2076_v35, %v2188_v23 }
 0x24f   : > { %v2196_v41 = vmul.f32 %v1050_v15, %v1035_v25  ;;  %v2200_v47 = vpop.permute.xlu0 %1021 }
 0x250   : > { %v1036_v52 = vsel %vm508_vm4, %v2078_v36, %v2200_v47 }
 0x251   : > { %v2211_v55 = vpop.permute.xlu1 %1066  ;;  %v2213_v53 = vmul.f32 %v1050_v15, %v1036_v52 }
 0x252   : > { %v1082_v60 = vsel %vm554_vm6, %v2080_v37, %v2211_v55 }
 0x253   : > { %2441 = vst [vmem:[#allocation8_spill] sm:$0xff] %v2213_v53  ;;  %v2219_v62 = vmul.f32 %v1097_v45, %v1082_v60  ;;  %v2223_v8 = vpop.permute.xlu0 %1068 }
 0x254   : > { %v1083_v22 = vsel %vm554_vm6, %v2082_v38, %v2223_v8 }
 0x255   : > { %2442 = vst [vmem:[#allocation9_spill] sm:$0xff] %v2219_v62  ;;  %v2229_v25 = vpop.permute.xlu1 %1113  ;;  %v2231_v15 = vmul.f32 %v1097_v45, %v1083_v22 }
 0x256   : > { %2443 = vst [vmem:[#allocation10_spill] sm:$0xff] %v2229_v25  ;;  %v1129_v52 = vsel %vm597_vm7, %v2087_v40, %v2229_v25  ;;  %v903_v40 = vrot.slane %v2095_v43, %v1839_v30 }
 0x257   : > { %2444 = vst [vmem:[#allocation11_spill] sm:$0xff] %v2231_v15  ;;  %v2237_v60 = vmul.f32 %v1144_v1, %v1129_v52  ;;  %v2241_v10 = vpop.permute.xlu0 %1115 }
 0x258   : > { %2446 = vst [vmem:[#allocation13_spill] sm:$0xff] %v2241_v10  ;;  %v1130_v62 = vsel %vm597_vm7, %v2090_v42, %v2241_v10  ;;  %v950_v10 = vrot.slane %v2109_v5, %v1839_v30 }
 0x259   : > { %2445 = vst [vmem:[#allocation12_spill] sm:$0xff] %v2237_v60  ;;  %v830_v45 = vpop.permute.xlu1 %829  ;;  %v2247_v22 = vmul.f32 %v1144_v1, %v1130_v62 }
 0x25a   : > { %v837_v15 = vsel %vm336_vm5, %v830_v45, %v2060_v26  ;;  %v839_v52 = vsel %vm336_vm5, %v826_v44, %v830_v45 }
 0x25b   : > { %2447 = vst [vmem:[#allocation14_spill] sm:$0xff] %v2247_v22  ;;  %v861_v60 = vmul.f32 %v852_v9, %v839_v52  ;;  %v862_v25 = vmul.f32 %v856_v6, %v837_v15  ;;  %v832_v53 = vpop.permute.xlu0 %831 }
 0x25c   : > { %v838_v62 = vsel %vm336_vm5, %v832_v53, %v2062_v19  ;;  %v840_v26 = vsel %vm336_vm5, %v2104_v48, %v832_v53  ;;  %v946_v19 = vrot.slane %v2109_v5, %v1810_v12  ;;  %v1263_v5 = vpack.c.bf16 %v2118_v51, %v2100_v46 }
 0x25d   : > { %867 = vst [vmem:[#allocation2 + $0x8] sm:$0xff] %v861_v60  ;;  %868 = vst [vmem:[#allocation2 + $0x10] sm:$0xff] %v862_v25  ;;  %v877_v44 = vpop.permute.xlu1 %876  ;;  %v864_v1 = vmul.f32 %v852_v9, %v840_v26  ;;  %v865_v15 = vmul.f32 %v856_v6, %v838_v62  ;;  %v993_v62 = vrot.slane %v2134_v57, %v1810_v12 }
 0x25e   : > { %v884_v45 = vsel %vm369_vm3, %v877_v44, %v2064_v27  ;;  %v886_v43 = vsel %vm369_vm3, %v2116_v50, %v877_v44 }
 0x25f   : > { %v908_v52 = vmul.f32 %v899_v39, %v886_v43  ;;  %v909_v22 = vmul.f32 %v903_v40, %v884_v45  ;;  %870 = vst [vmem:[#allocation2 + $0x20] sm:$0xff] %v864_v1  ;;  %871 = vst [vmem:[#allocation2 + $0x28] sm:$0xff] %v865_v15  ;;  %v879_v9 = vpop.permute.xlu0 %878  ;;  %v1264_v6 = vpack.c.bf16 %v864_v1, %v861_v60 }
 0x260   : > { %v1265_v48 = vpack.c.bf16 %v865_v15, %v862_v25  ;;  %v885_v27 = vsel %vm369_vm3, %v879_v9, %v2066_v28  ;;  %v887_v50 = vsel %vm369_vm3, %v2129_v56, %v879_v9  ;;  %v997_v1 = vrot.slane %v2134_v57, %v1839_v30 }
 0x261   : > { %914 = vst [vmem:[#allocation2 + $0x38] sm:$0xff] %v908_v52  ;;  %915 = vst [vmem:[#allocation2 + $0x40] sm:$0xff] %v909_v22  ;;  %v924_v53 = vpop.permute.xlu1 %923  ;;  %v911_v26 = vmul.f32 %v899_v39, %v887_v50  ;;  %v912_v60 = vmul.f32 %v903_v40, %v885_v27  ;;  %1315 = vmatprep.subr.bf16.mxu0 %v1264_v6  ;;  %v2448_v40 = vmov 0   ;;  %v1266_v57 = vpack.c.bf16 %v2143_v59, %v2124_v54 }
 0x262   : > { %v931_v25 = vsel %vm412_vm1, %v924_v53, %v2068_v31  ;;  %v933_v28 = vsel %vm412_vm1, %v2141_v58, %v924_v53  ;;  %1359 = vmatpush1.bf16.msra.mxu1 %v1265_v48  ;;  %1316 = vmatpush1.bf16.msra.mxu0 %v1263_v5  ;;  %v1042_v27 = vrot.slane %v2159_v0, %v1836_v29 }
 0x263   : > { %v955_v44 = vmul.f32 %v946_v19, %v933_v28  ;;  %v956_v56 = vmul.f32 %v950_v10, %v931_v25  ;;  %917 = vst [vmem:[#allocation2 + $0x50] sm:$0xff] %v911_v26  ;;  %918 = vst [vmem:[#allocation2 + $0x58] sm:$0xff] %v912_v60  ;;  %v926_v46 = vpop.permute.xlu0 %925  ;;  %1360 = vmatprep.subr.bf16.mxu1 %v2448_v40  ;;  %v1267_v51 = vpack.c.bf16 %v911_v26, %v908_v52 }
 0x264   : > { %v1268_v39 = vpack.c.bf16 %v912_v60, %v909_v22  ;;  %v932_v31 = vsel %vm412_vm1, %v926_v46, %v2070_v32  ;;  %v934_v58 = vsel %vm412_vm1, %v2154_v63, %v926_v46  ;;  %v1046_v50 = vrot.slane %v2159_v0, %v1810_v12 }
 0x265   : > { %v971_v15 = vpop.permute.xlu1 %970  ;;  %v958_v45 = vmul.f32 %v946_v19, %v934_v58  ;;  %v959_v43 = vmul.f32 %v950_v10, %v932_v31  ;;  %1317 = vmatprep.subr.bf16.mxu0 %v1267_v51  ;;  %v1276_v26 = vpack.c.bf16 %v1953_v20, %v1943_v14  ;;  %v1275_v28 = vpack.c.bf16 %v1947_v17, %v1939_v7  ;;  %v1587_v7 = vld [vmem:[%s2423_s1 + $0x18] ss:$8 sm:$0x7] }
 0x266   : > { %v978_v9 = vsel %vm458_vm2, %v971_v15, %v2072_v33  ;;  %v980_v22 = vsel %vm458_vm2, %v2165_v2, %v971_v15  ;;  %1361 = vmatpush1.bf16.msra.mxu1 %v1268_v39  ;;  %1318 = vmatpush1.bf16.msra.mxu0 %v1266_v57  ;;  %v1269_v2 = vpack.c.bf16 %v2167_v4, %v2149_v61  ;;  %v2449_v39 = vld [vmem:[#allocation8_spill] sm:$0xff]  ;;  %v2450_v57 = vld [vmem:[#allocation7_spill] sm:$0xff] }
 0x267   : > { %v1002_v32 = vmul.f32 %v993_v62, %v980_v22  ;;  %v1003_v52 = vmul.f32 %v997_v1, %v978_v9  ;;  %v973_v63 = vpop.permute.xlu0 %972  ;;  %1362 = vmatprep.subr.bf16.mxu1 %v2448_v40  ;;  %v1270_v6 = vpack.c.bf16 %v958_v45, %v955_v44  ;;  %v1271_v54 = vpack.c.bf16 %v959_v43, %v956_v56  ;;  %v2451_v43 = vld [vmem:[#allocation10_spill] sm:$0xff] }
 0x268   : > { %v979_v10 = vsel %vm458_vm2, %v973_v63, %v2074_v34  ;;  %v981_v33 = vsel %vm458_vm2, %v2177_v18, %v973_v63  ;;  %v1272_v61 = vpack.c.bf16 %v2190_v24, %v2173_v13  ;;  %v1093_v13 = vrot.slane %v2182_v21, %v1810_v12 }
 0x269   : > { %v2314_v59 = vpop.permute.xlu1 %1168  ;;  %v1005_v19 = vmul.f32 %v993_v62, %v981_v33  ;;  %v1006_v48 = vmul.f32 %v997_v1, %v979_v10  ;;  %1319 = vmatprep.subr.bf16.mxu0 %v1270_v6  ;;  %v1089_v62 = vrot.slane %v2182_v21, %v1836_v29  ;;  %v1136_v21 = vrot.slane %v2205_v49, %v1836_v29  ;;  %v2452_v6 = vld [vmem:[#allocation13_spill] sm:$0xff] }
 0x26a   : > { %1363 = vmatpush1.bf16.msra.mxu1 %v1271_v54  ;;  %1320 = vmatpush1.bf16.msra.mxu0 %v1269_v2  ;;  %v1280_v31 = vpack.c.bf16 %v2449_v39, %v2196_v41  ;;  %v2453_v33 = vld [vmem:[#allocation9_spill] sm:$0xff]  ;;  %v2454_v2 = vld [vmem:[#allocation11_spill] sm:$0xff] }
 0x26b   : > { %v2322_v34 = vpop.permute.xlu0 %1170  ;;  %1364 = vmatprep.subr.bf16.mxu1 %v2448_v40  ;;  %v1273_v18 = vpack.c.bf16 %v1005_v19, %v1002_v32  ;;  %v1274_v53 = vpack.c.bf16 %v1006_v48, %v1003_v52  ;;  %v1187_v32 = vrot.slane %v1587_v7, %v1810_v12  ;;  %v1283_v19 = vpack.c.bf16 %v2454_v2, %v2453_v33 }
 0x26d   : > { %v1024_v5 = vpop.permute.xlu1 %1023  ;;  %1321 = vmatprep.subr.bf16.mxu0 %v1273_v18  ;;  %v1183_v18 = vrot.slane %v1587_v7, %v1836_v29 }
 0x26e   : > { %v1031_v4 = vsel %vm508_vm4, %v1024_v5, %v2076_v35  ;;  %v1033_v0 = vsel %vm508_vm4, %v2188_v23, %v1024_v5  ;;  %1365 = vmatpush1.bf16.msra.mxu1 %v1274_v53  ;;  %1322 = vmatpush1.bf16.msra.mxu0 %v1272_v61  ;;  %v1277_v35 = vpack.c.bf16 %v1945_v16, %v1937_v3 }
 0x26f   : > { %v1054_v60 = vmul.f32 %v1042_v27, %v1033_v0  ;;  %v1055_v25 = vmul.f32 %v1046_v50, %v1031_v4  ;;  %v1026_v24 = vpop.permute.xlu0 %1025  ;;  %1323 = vmatprep.subr.bf16.mxu0 %v1276_v26  ;;  %1366 = vmatprep.subr.bf16.mxu1 %v2448_v40  ;;  %v2456_v26 = vld [vmem:[#allocation14_spill] sm:$0xff] }
 0x270   : > { %v1032_v23 = vsel %vm508_vm4, %v1026_v24, %v2078_v36  ;;  %v1034_v14 = vsel %vm508_vm4, %v2200_v47, %v1026_v24  ;;  %v1140_v47 = vrot.slane %v2205_v49, %v1810_v12 }
 0x271   : > { %v1071_v20 = vpop.permute.xlu1 %1070  ;;  %v1057_v44 = vmul.f32 %v1042_v27, %v1034_v14  ;;  %v1058_v56 = vmul.f32 %v1046_v50, %v1032_v23 }
 0x272   : > { %v1078_v3 = vsel %vm554_vm6, %v1071_v20, %v2080_v37  ;;  %v1080_v16 = vsel %vm554_vm6, %v2211_v55, %v1071_v20  ;;  %1367 = vmatpush1.bf16.msra.mxu1 %v1277_v35  ;;  %1324 = vmatpush1.bf16.msra.mxu0 %v1275_v28 }
 0x273   : > { %v1101_v36 = vmul.f32 %v1089_v62, %v1080_v16  ;;  %v1102_v1 = vmul.f32 %v1093_v13, %v1078_v3  ;;  %v1073_v46 = vpop.permute.xlu0 %1072  ;;  %1368 = vmatprep.subr.bf16.mxu1 %v2448_v40  ;;  %v1279_v17 = vpack.c.bf16 %v1058_v56, %v1055_v25  ;;  %v1278_v37 = vpack.c.bf16 %v1057_v44, %v1054_v60  ;;  %v1647_v56 = vld [vmem:[%s2427_s5] ss:$8 sps:$4 sm:$0xff]  }
 0x274   : > { %v1079_v55 = vsel %vm554_vm6, %v1073_v46, %v2082_v38  ;;  %v1081_v51 = vsel %vm554_vm6, %v2223_v8, %v1073_v46 }
 0x275   : > { %v1118_v49 = vpop.permute.xlu1 %1117  ;;  %v1104_v58 = vmul.f32 %v1089_v62, %v1081_v51  ;;  %v1105_v15 = vmul.f32 %v1093_v13, %v1079_v55  ;;  %1325 = vmatprep.subr.bf16.mxu0 %v1279_v17  ;;  %v2455_v62 = vld [vmem:[#allocation12_spill] sm:$0xff] }
 0x276   : > { %v1125_v45 = vsel %vm597_vm7, %v1118_v49, %v2450_v57  ;;  %v1127_v9 = vsel %vm597_vm7, %v2451_v43, %v1118_v49  ;;  %1369 = vmatpush1.bf16.msra.mxu1 %v1280_v31  ;;  %1326 = vmatpush1.bf16.msra.mxu0 %v1278_v37  ;;  %v1286_v60 = vpack.c.bf16 %v2456_v26, %v2455_v62 }
 0x277   : > { %v1148_v38 = vmul.f32 %v1136_v21, %v1127_v9  ;;  %v1149_v22 = vmul.f32 %v1140_v47, %v1125_v45  ;;  %v1120_v8 = vpop.permute.xlu0 %1119  ;;  %1370 = vmatprep.subr.bf16.mxu1 %v2448_v40  ;;  %v1282_v41 = vpack.c.bf16 %v1105_v15, %v1102_v1  ;;  %v1281_v52 = vpack.c.bf16 %v1104_v58, %v1101_v36 }
 0x278   : > { %v1126_v63 = vsel %vm597_vm7, %v1120_v8, %v2090_v42  ;;  %v1128_v54 = vsel %vm597_vm7, %v2452_v6, %v1120_v8  ;;  %v1191_v42 = vrot.slane %v1587_v7, %v1839_v30  ;;  %v1405_v36 = vstv %s1569_s25 }
 0x279   : > { %v1165_v10 = vpop.permute.xlu1 %1164  ;;  %v1151_v12 = vmul.f32 %v1136_v21, %v1128_v54  ;;  %v1152_v48 = vmul.f32 %v1140_v47, %v1126_v63  ;;  %1327 = vmatprep.subr.bf16.mxu0 %v1282_v41 }
 0x27a   : > { %v1172_v27 = vsel %vm640_vm8, %v1165_v10, %v2314_v59  ;;  %1371 = vmatpush1.bf16.msra.mxu1 %v1283_v19  ;;  %1328 = vmatpush1.bf16.msra.mxu0 %v1281_v52 }
 0x27b   : > { %v1196_v50 = vmul.f32 %v1187_v32, %v1172_v27  ;;  %v1167_v53 = vpop.permute.xlu0 %1166  ;;  %1372 = vmatprep.subr.bf16.mxu1 %v2448_v40  ;;  %v1285_v5 = vpack.c.bf16 %v1152_v48, %v1149_v22  ;;  %v1284_v61 = vpack.c.bf16 %v1151_v12, %v1148_v38 }
 0x27c   : > { %v1173_v4 = vsel %vm640_vm8, %v1167_v53, %v2322_v34 }
 0x27d   : > { %v1161_v0 = vpop.permute.xlu1 %1160  ;;  %v1199_v25 = vmul.f32 %v1187_v32, %v1173_v4  ;;  %1329 = vmatprep.subr.bf16.mxu0 %v1285_v5 }
 0x27e   : > { %v1174_v29 = vsel %vm640_vm8, %v1161_v0, %v1165_v10  ;;  %v1176_v30 = vsel %vm640_vm8, %v2314_v59, %v1161_v0  ;;  %1373 = vmatpush1.bf16.msra.mxu1 %v1286_v60  ;;  %1330 = vmatpush1.bf16.msra.mxu0 %v1284_v61 }
 0x27f   : > { %v1195_v13 = vmul.f32 %v1183_v18, %v1174_v29  ;;  %v1197_v24 = vmul.f32 %v1191_v42, %v1176_v30  ;;  %v1163_v35 = vpop.permute.xlu0 %1162  ;;  %v1288_v23 = vpack.c.bf16 %v1199_v25, %v1196_v50  ;;  %1374 = vmatprep.subr.bf16.mxu1 %v2448_v40 }
 0x280   : > { %v1175_v14 = vsel %vm640_vm8, %v1163_v35, %v1167_v53  ;;  %v1177_v20 = vsel %vm640_vm8, %v2322_v34, %v1163_v35 }
 0x281   : > { %v1198_v21 = vmul.f32 %v1183_v18, %v1175_v14  ;;  %v1200_v28 = vmul.f32 %v1191_v42, %v1177_v20  ;;  %1331 = vmatprep.subr.bf16.mxu0 %v1288_v23 }
 0x283   : > { %v1287_v59 = vpack.c.bf16 %v1198_v21, %v1195_v13  ;;  %v1289_v44 = vpack.c.bf16 %v1200_v28, %v1197_v24  ;;  %v1457_v24 = vstv %s1570_s26 }
 0x285   : > { %1332 = vmatpush1.bf16.msra.mxu0 %v1287_v59  ;;  %1375 = vmatpush1.bf16.msra.mxu1 %v1289_v44  ;;  %v1694_v44 = vmov 1966171168  }
 0x288   : > { %1348 = vmatmul.mubr.bf16.vlgmr.msra.gmra.mrb[4].mxu0 %v1647_v56  ;;  %1391 = vmatmul.mubr.bf16.vlgmr.msra.gmra.mrb[4].mxu1 %v1647_v56  ;;  %v1469_v56 = vunpack.c.l.s4 %v1694_v44 }
 0x28e   : > { %v1295_v40 = vpop.permute.xlu1 %1294 }
 0x290   : > { %v1300_v3 = vpop.permute.xlu0 %1299 }
 0x292   : > { %v1423_v22 = vpop.permute.xlu1 %1422 }
 0x294   : > { %v1428_v41 = vpop.permute.xlu0 %1427 }
 0x35b   : > { %v1349_v16 = vpop.f32.mrb[4].mxu0  ;;  %v1392_v11 = vpop.f32.mrb[4].mxu1 }
 0x35c   : > { %v1350_v34 = vadd.f32 %v1349_v16, %v1295_v40  ;;  %v1393_v1 = vadd.f32 %v1392_v11, %v1295_v40  ;;  %v1351_v47 = vpop.f32.mrb[5].mxu0  ;;  %v1394_v46 = vpop.f32.mrb[5].mxu1 }
 0x35d   : > { %v1352_v7 = vadd.f32 %v1351_v47, %v1295_v40  ;;  %v1353_v17 = vpop.f32.mrb[6].mxu0  ;;  %v1395_v37 = vpop.f32.mrb[6].mxu1  ;;  %v1470_v40 = vunpack.c.0.s8 %v1469_v56 }
 0x35e   : > { %vm1399_vm1 = vcmp.ge.f32.partialorder %v1350_v34, 0.0  ;;  %v1406_v55 = vmul.f32 %v1405_v36, %v1350_v34  ;;  %v1408_v51 = vmul.f32 %v1405_v36, %v1393_v1  ;;  %v1355_v49 = vpop.f32.mrb[7].mxu0  ;;  %v1397_v39 = vpop.f32.mrb[7].mxu1  ;;  %vm1401_vm2 = vcmp.ge.f32.partialorder %v1393_v1, 0.0 }
 0x35f   : > { %v1407_v31 = vmul.f32 %v1405_v36, %v1352_v7  ;;  %v1354_v58 = vadd.f32 %v1353_v17, %v1300_v3  ;;  %v1396_v15 = vadd.f32 %v1395_v37, %v1300_v3  ;;  %vm1400_vm3 = vcmp.ge.f32.partialorder %v1352_v7, 0.0 }
 0x360   : > { %v1356_v57 = vadd.f32 %v1355_v49, %v1300_v3  ;;  %v1412_v45 = vsel %vm1399_vm1, %v1350_v34, %v1406_v55  ;;  %v1414_v43 = vsel %vm1401_vm2, %v1393_v1, %v1408_v51  ;;  %v2458_v17 = vlaneseq }
 0x361   : > { %vm1402_vm4 = vcmp.ge.f32.partialorder %v1354_v58, 0.0  ;;  %v1409_v9 = vmul.f32 %v1405_v36, %v1354_v58  ;;  %vm1404_vm5 = vcmp.ge.f32.partialorder %v1396_v15, 0.0  ;;  %v1411_v38 = vmul.f32 %v1405_v36, %v1396_v15 }
 0x362   : > { %v1413_v32 = vsel %vm1400_vm3, %v1352_v7, %v1407_v31  ;;  %vm1403_vm6 = vcmp.ge.f32.partialorder %v1356_v57, 0.0  ;;  %v1410_v8 = vmul.f32 %v1405_v36, %v1356_v57  ;;  %v1430_v52 = vmul.f32 %v1423_v22, %v1412_v45  ;;  %v2457_v36 = vld [vmem:[#allocation6_spill] sm:$0xff] }
 0x363   : > { %v1415_v63 = vsel %vm1402_vm4, %v1354_v58, %v1409_v9  ;;  %v1417_v6 = vsel %vm1404_vm5, %v1396_v15, %v1411_v38  ;;  %v1432_v54 = vmul.f32 %v1423_v22, %v1414_v43  ;;  %v1431_v19 = vmul.f32 %v1423_v22, %v1413_v32 }
 0x364   : > { %v1433_v10 = vmul.f32 %v1428_v41, %v1415_v63  ;;  %v1435_v33 = vmul.f32 %v1428_v41, %v1417_v6  ;;  %v1416_v2 = vsel %vm1403_vm6, %v1356_v57, %v1410_v8  ;;  %v1473_v11 = vsub.s32 %v1470_v40, %v2457_v36 }
 0x365   : > { %v1434_v12 = vmul.f32 %v1428_v41, %v1416_v2  ;;  %vm1493_vm7 = vcmp.lt.s32.totalorder %v2458_v17, 384 }
 0x366   : > { %v1436_v48 = vadd.f32 %v1433_v10, %v1430_v52  ;;  %v1450_v27 = vadd.f32 %v1435_v33, %v1432_v54 }
 0x367   : > { %v1443_v50 = vadd.f32 %v1434_v12, %v1431_v19 }
 0x368   : > { %v1437_v18 = vrot.slane %v1436_v48, 4  ;;  %v1451_v42 = vrot.slane %v1450_v27, 4 }
 0x369   : > { %v1444_v53 = vrot.slane %v1443_v50, 4 }
 0x36a   : > { %v1438_v5 = vadd.f32 %v1437_v18, %v1436_v48  ;;  %v1452_v61 = vadd.f32 %v1451_v42, %v1450_v27 }
 0x36b   : > { %v1445_v4 = vadd.f32 %v1444_v53, %v1443_v50 }
 0x36c   : > { %v1439_v0 = vrot.slane %v1438_v5, 2  ;;  %v1453_v62 = vrot.slane %v1452_v61, 2 }
 0x36d   : > { %v1446_v26 = vrot.slane %v1445_v4, 2 }
 0x36e   : > { %v1440_v60 = vadd.f32 %v1439_v0, %v1438_v5  ;;  %v1454_v25 = vadd.f32 %v1453_v62, %v1452_v61 }
 0x36f   : > { %v1447_v29 = vadd.f32 %v1446_v26, %v1445_v4 }
 0x370   : > { %v1441_v30 = vrot.slane %v1440_v60, 1  ;;  %v1455_v13 = vrot.slane %v1454_v25, 1 }
 0x371   : > { %v1448_v35 = vrot.slane %v1447_v29, 1 }
 0x372   : > { %v1442_v23 = vadd.f32 %v1441_v30, %v1440_v60  ;;  %v1456_v14 = vadd.f32 %v1455_v13, %v1454_v25 }
 0x373   : > { %v1449_v20 = vadd.f32 %v1448_v35, %v1447_v29 }
 0x374   : > { %v1458_v21 = vadd.f32 %v1457_v24, %v1442_v23  ;;  %v1460_v28 = vadd.f32 %v1457_v24, %v1456_v14 }
 0x375   : > { %v1459_v59 = vadd.f32 %v1457_v24, %v1449_v20 }
 0x376   : > { %1648 = vtanh.f32 %v1458_v21 }
 0x377   : > { %1650 = vtanh.f32 %v1460_v28 }
 0x378   : > { %1652 = vtanh.f32 %v1459_v59 }
 0x380   : > { %v1649_v3 = vpop.eup %1648 }
 0x381   : > { %v1651_v16 = vpop.eup %1650 }
 0x382   : > { %v1653_v34 = vpop.eup %1652  ;;  %v1481_v47 = vrot.slane %v1651_v16, %v1473_v11 }
 0x383   : > { %v1467_v1 = vcombine.low %v1649_v3, %v1653_v34 }
 0x385   : > { %v1474_v46 = vrot.slane %v1467_v1, %v1473_v11 }
 0x387   : > { %v1482_v7 = vcombine.low %v1474_v46, %v1481_v47 }
 0x389   : > { %v1489_v37 = vrot.slane %v1482_v7, %v1473_v11 }
 0x38b   : > { %1495 = vst.msk [vmem:[%s317_s9] sm:$0x7] %vm1493_vm7, %v1489_v37 }
 0x38c PF: > { %s19_s27 = sadd.s32 1, %s1679_s27  }
 0x38d   : > { %p16_p1 = scmp.ge.s32.totalorder %s19_s27, 4  }
 0x38f   :  { %18 = sbr.rel (!%p16_p1) target bundleno = 1 (0x1), region = 94 }
 0x396   :  { %1515 = vsyncpa [#allocation4], 1 }
 0x397   :  { %1517 = vsyncpa [#allocation4 + $0x1], 1 }

</bundles_post_ra>
